<compile_context>
chip_gen: v7x
topology: tpu7x:2x2x1
jax: 0.10.0
libtpu: 0.0.40
codegen_flags: <defaults>
</compile_context>

<pallas_src>
import functools

import numpy as np
import jax
import jax.numpy as jnp
from jax.experimental import pallas as pl
from jax.experimental.pallas import tpu as pltpu


# ----------------------------------------------------------------------------
# Small helpers
# ----------------------------------------------------------------------------
def _round_up(x, m):
    return ((x + m - 1) // m) * m


def _vmem_capacity_bytes():
    """Generation-aware VMEM capacity; conservative 64 MiB (v7x) fallback."""
    try:
        info = pltpu.get_tpu_info()
        for name in ("vmem_capacity_bytes", "vmem_bytes", "vmem_size_bytes"):
            v = getattr(info, name, None)
            if isinstance(v, (int, np.integer)) and v > 0:
                return int(v)
    except Exception:
        pass
    return 64 << 20


def _compiler_params(dimension_semantics, footprint_bytes, vmem_cap):
    # Limit is always >= the real (double-buffered) block footprint + headroom,
    # and is capped at ~80% of the physical per-core VMEM (so ~102 MiB on
    # 128 MiB v5e/v6e parts, ~51 MiB on 64 MiB v7x).  Tiles are *sized* to the
    # budget elsewhere; the limit is never clamped below what the blocks need.
    limit = int(min(max(footprint_bytes + (8 << 20), 32 << 20),
                    int(0.8 * vmem_cap)))
    return pltpu.CompilerParams(dimension_semantics=dimension_semantics,
                                vmem_limit_bytes=limit)


# ----------------------------------------------------------------------------
# Pallas kernels
# ----------------------------------------------------------------------------
def _transform_kernel(x_ref, w_ref, sid_ref, brow_ref, out_ref, *, num_spaces,
                      ds_pad):
    """Grid axis 0: neighbor-row tiles ("parallel").

    x_ref    : (tN, Ds)          bf16  neighbor entity embeddings
    w_ref    : (Ds, S*ds_pad)    bf16  concatenated per-space weights (BN folded,
                                       each slab zero-padded to ds_pad lanes)
    sid_ref  : (tN, 1)           int32 final relation space per row (-1 = pad)
    brow_ref : (tN, ds_pad)      f32   per-row bias slab (BN folded, host gather)
    out_ref  : (tN, ds_pad)      bf16  ReLU'ed, space-selected embedding
    """
    z = jnp.dot(x_ref[...], w_ref[...], preferred_element_type=jnp.float32)
    sid = sid_ref[...]                                     # (tN, 1) int32
    acc = jnp.where(sid == 0, z[:, :ds_pad], 0.0)
    for s in range(1, num_spaces):                         # static unroll, S small
        acc = acc + jnp.where(sid == s, z[:, s * ds_pad:(s + 1) * ds_pad], 0.0)
    # Bias + ReLU only on the narrow selected slab (not the S*ds_pad wide z).
    out_ref[...] = jnp.maximum(acc + brow_ref[...], 0.0).astype(out_ref.dtype)


def _score_kernel(a_ref, xf_ref, rs_ref, rt_ref, amp_ref, freq_ref, phi_ref,
                  dates_ref, out_ref, acc_ref, *, t_dim):
    """Grid: (batch tiles ["parallel"], neighbor-column tiles ["arbitrary"]).

    a_ref     : (tB, tNk)      bf16  A_diff = (avg-pool gather)_head - (...)_tail
    xf_ref    : (tNk, ds_pad)  bf16  transformed neighbor embeddings
    rs_ref    : (tB, ds_pad)   f32   relation embedding (structural part, padded)
    rt_ref    : (tB, Dt)       f32   relation embedding (time part)
    amp_ref   : (tB, 6*Dt)     f32   [head y|m|d amps | -tail y|m|d amps]
    freq_ref  : (tB, 6*Dt)     f32   [head y|m|d freqs | tail y|m|d freqs]
    phi_ref   : (tB, 6*Dt)     f32   [head y|m|d phis  | tail y|m|d phis]
    dates_ref : (tB, 6*Dt)     f32   pre-broadcast [Y|M|D|Y|M|D] blocks
    out_ref   : (1, tB)        f32   scores  -||h + r - t||_2   (lane dense)
    acc_ref   : (tB, ds_pad)   f32   VMEM accumulator over neighbor-column tiles
    """
    k = pl.program_id(1)

    @pl.when(k == 0)
    def _():
        acc_ref[...] = jnp.zeros_like(acc_ref)

    acc_ref[...] += jnp.dot(a_ref[...], xf_ref[...],
                            preferred_element_type=jnp.float32)

    @pl.when(k == pl.num_programs(1) - 1)
    def _():
        diff_s = acc_ref[...] + rs_ref[...]
        # Diachronic embedding of head minus tail in one fused elementwise pass
        # (tail amplitudes are pre-negated on host).
        tcomb = amp_ref[...] * jnp.sin(freq_ref[...] * dates_ref[...]
                                       + phi_ref[...])
        diff_t = rt_ref[...]
        for c in range(6):                                  # static, tiny slices
            diff_t = diff_t + tcomb[:, c * t_dim:(c + 1) * t_dim]
        sq = (jnp.sum(diff_s * diff_s, axis=1)
              + jnp.sum(diff_t * diff_t, axis=1))
        # dropout: eval-mode no-op.
        out_ref[...] = (-jnp.sqrt(sq))[None, :]


# ----------------------------------------------------------------------------
# Pallas wrappers
# ----------------------------------------------------------------------------
def transform_forward(x_bf, w_bf, sid, b_row, *, num_spaces, ds_pad, tile_n,
                      vmem_cap):
    n_pad, k_dim = x_bf.shape
    wide = w_bf.shape[1]
    footprint = (2 * (tile_n * k_dim * 2 + k_dim * wide * 2 + tile_n * 4
                      + tile_n * ds_pad * 4 + tile_n * ds_pad * 2)
                 + tile_n * wide * 4)          # headroom for the z intermediate
    return pl.pallas_call(
        functools.partial(_transform_kernel, num_spaces=num_spaces,
                          ds_pad=ds_pad),
        out_shape=jax.ShapeDtypeStruct((n_pad, ds_pad), jnp.bfloat16),
        grid_spec=pltpu.PrefetchScalarGridSpec(
            num_scalar_prefetch=0,
            grid=(n_pad // tile_n,),
            in_specs=[
                pl.BlockSpec((tile_n, k_dim), lambda i: (i, 0)),    # x
                pl.BlockSpec((k_dim, wide), lambda i: (0, 0)),      # W_wide
                pl.BlockSpec((tile_n, 1), lambda i: (i, 0)),        # space id
                pl.BlockSpec((tile_n, ds_pad), lambda i: (i, 0)),   # bias rows
            ],
            out_specs=pl.BlockSpec((tile_n, ds_pad), lambda i: (i, 0)),
        ),
        compiler_params=_compiler_params(("parallel",), footprint, vmem_cap),
    )(x_bf, w_bf, sid, b_row)


def score_forward(a_diff, xfrm, r_s, r_t, amp6, freq6, phi6, dates6, *,
                  t_dim, tile_b, tile_nk, vmem_cap):
    b_pad, n_pad = a_diff.shape
    ds_pad = xfrm.shape[1]
    d6 = 6 * t_dim
    per_step = (tile_b * tile_nk * 2 + tile_nk * ds_pad * 2
                + tile_b * ds_pad * 4 + tile_b * t_dim * 4
                + 4 * tile_b * d6 * 4 + tile_b * 4)
    footprint = 2 * per_step + tile_b * ds_pad * 4
    grid = (b_pad // tile_b, n_pad // tile_nk)
    return pl.pallas_call(
        functools.partial(_score_kernel, t_dim=t_dim),
        out_shape=jax.ShapeDtypeStruct((1, b_pad), jnp.float32),
        grid_spec=pltpu.PrefetchScalarGridSpec(
            num_scalar_prefetch=0,
            grid=grid,
            in_specs=[
                pl.BlockSpec((tile_b, tile_nk), lambda i, k: (i, k)),   # A_diff
                pl.BlockSpec((tile_nk, ds_pad), lambda i, k: (k, 0)),   # xf
                pl.BlockSpec((tile_b, ds_pad), lambda i, k: (i, 0)),    # r_s
                pl.BlockSpec((tile_b, t_dim), lambda i, k: (i, 0)),     # r_t
                pl.BlockSpec((tile_b, d6), lambda i, k: (i, 0)),        # amp6
                pl.BlockSpec((tile_b, d6), lambda i, k: (i, 0)),        # freq6
                pl.BlockSpec((tile_b, d6), lambda i, k: (i, 0)),        # phi6
                pl.BlockSpec((tile_b, d6), lambda i, k: (i, 0)),        # dates6
            ],
            out_specs=pl.BlockSpec((1, tile_b), lambda i, k: (0, i)),
            scratch_shapes=[pltpu.VMEM((tile_b, ds_pad), jnp.float32)],
        ),
        compiler_params=_compiler_params(("parallel", "arbitrary"),
                                         footprint, vmem_cap),
    )(a_diff, xfrm, r_s, r_t, amp6, freq6, phi6, dates6)


# ----------------------------------------------------------------------------
# Host-side graph bookkeeping (mirrors get_link / get_gold_relations /
# get_context / Encoder bundling / PoolingLayer deterministically)
# ----------------------------------------------------------------------------
def build_graph(train_triples, entities):
    train_link = {}
    for h, r, t in train_triples:
        train_link.setdefault(h, [])
        train_link.setdefault(t, [])
        if t not in train_link[h]:
            train_link[h].append(t)
        if h not in train_link[t]:
            train_link[t].append(h)
    gold_rels = {}
    for h, r, t in train_triples:
        gold_rels[(h, t)] = r

    assign = {}
    neighbor_dict = {}
    for i, e in enumerate(entities):
        near = train_link.get(e, [])     # degrees kept <= num_neighbor_samples
        for k in near:
            if k not in neighbor_dict:
                neighbor_dict[k] = len(neighbor_dict)
            assign.setdefault(neighbor_dict[k], []).append(i)
    neighbor = [k for k, _ in sorted(neighbor_dict.items(), key=lambda l: l[1])]
    return gold_rels, neighbor, assign


def build_encoder_maps(neighbor, assign, entities, gold_rels, num_rel):
    S = 2 * num_rel
    N = len(neighbor)
    E = len(entities)

    bundle = {}                       # relation space -> list of neighbor ids v
    for v, k in enumerate(neighbor):
        for i in assign[v]:
            e = entities[i]
            if (e, k) in gold_rels:
                r = gold_rels[(e, k)] * 2
            else:
                r = gold_rels[(k, e)] * 2 + 1
            bundle.setdefault(r, []).append(v)

    # result[assignR[space, i]] = rx  ->  last write wins, following Python dict
    # insertion order (same iteration order PyTorch's ddict uses).
    final_space = [None] * N
    for space in bundle:
        for v in bundle[space]:
            final_space[v] = space
    assert all(s is not None for s in final_space), \
        "every neighbor must be written by at least one relation-space bundle"
    space_id = np.asarray(final_space, np.int32)

    # BatchNorm1d (eval) applied only when the bundle batch size > 1
    bn_scale = np.ones((S,), np.float32)
    for s, vs in bundle.items():
        if len(vs) > 1:
            bn_scale[s] = 1.0 / np.sqrt(1.0 + 1e-5)

    # avg pooling: pooled[i] = mean_{v : i in assign[v]} result[v]
    pool_a = np.zeros((E, N), np.float32)
    for v in range(N):
        for i in assign[v]:
            pool_a[i, v] = 1.0
    pool_a = pool_a / pool_a.sum(axis=1, keepdims=True)
    return space_id, bn_scale, pool_a


def xavier_uniform(key, shape):
    bound = np.sqrt(6.0 / (shape[-2] + shape[-1])) if len(shape) > 1 else 1.0
    return jax.random.uniform(key, shape, jnp.float32, -bound, bound)


# ----------------------------------------------------------------------------
# Full forward pass (Pallas kernels + host/JAX glue)
# ----------------------------------------------------------------------------
def de_sgraph_forward(params, heads, rels, tails, years, months, days,
                      train_triples, num_rel, s_dim, t_dim):
    heads_np = np.asarray(heads)
    tails_np = np.asarray(tails)
    entities = sorted(set(heads_np.tolist()) | set(tails_np.tolist()))  # unique()
    ent_pos = {e: i for i, e in enumerate(entities)}

    gold_rels, neighbor, assign = build_graph(train_triples, entities)
    space_id, bn_scale, pool_a = build_encoder_maps(neighbor, assign, entities,
                                                    gold_rels, num_rel)

    S = 2 * num_rel
    N = len(neighbor)
    B = heads_np.shape[0]
    ds_pad = _round_up(s_dim, 128)     # lane-dense per-space slab width

    vmem_cap = _vmem_capacity_bytes()
    budget = max(int(0.75 * vmem_cap) - (8 << 20), 24 << 20)

    # --- neighbor-axis padding / tiling ---------------------------------------
    n_base = _round_up(max(N, 1), 128)
    if n_base <= 512:
        n_pad, tile_n, tile_nk = n_base, n_base, n_base
    elif n_base <= 8192:
        n_pad = _round_up(n_base, 512)
        tile_n, tile_nk = 512, n_pad
    else:
        n_pad = _round_up(n_base, 8192)
        tile_n, tile_nk = 512, 8192      # score kernel tiles N ("arbitrary" axis)

    # --- batch tile selection: biggest tile that fits the VMEM budget ---------
    def score_footprint(tb):
        per = (tb * tile_nk * 2 + tile_nk * ds_pad * 2 + tb * ds_pad * 4
               + tb * t_dim * 4 + 4 * tb * 6 * t_dim * 4 + tb * 4)
        return 2 * per + tb * ds_pad * 4

    tile_b = 128
    for cand in (512, 256, 128):
        if score_footprint(cand) <= budget:
            tile_b = cand
            break
    b_req = _round_up(max(B, 1), 8)
    if b_req <= tile_b:
        tile_b = b_req                  # single batch step (tiny batches)
    b_pad = _round_up(B, tile_b)
    # NOTE: on v7x (2 TensorCores) large batches naturally give >= 2 "parallel"
    # grid steps; tiny batches run on one core, which is fine at this size.

    # --- fused wide weights: per-space slabs padded to ds_pad, BN folded ------
    w_wide = np.zeros((s_dim, S * ds_pad), np.float32)
    b_slab = np.zeros((S, ds_pad), np.float32)
    for j in range(num_rel):
        for space, wkey, bkey in ((2 * j, "WH", "bH"), (2 * j + 1, "WT", "bT")):
            w_wide[:, space * ds_pad:space * ds_pad + s_dim] = (
                np.asarray(params[wkey][j]) * bn_scale[space])
            b_slab[space, :s_dim] = np.asarray(params[bkey][j]) * bn_scale[space]

    # --- neighbor embeddings, space ids, per-row gathered bias (padded) -------
    x = np.zeros((n_pad, s_dim), np.float32)
    x[:N] = np.asarray(params["ent_embs"])[np.asarray(neighbor, np.int64)]
    sid = np.full((n_pad, 1), -1, np.int32)
    sid[:N, 0] = space_id
    b_row = np.zeros((n_pad, ds_pad), np.float32)
    b_row[:N] = b_slab[space_id]

    x_bf = jnp.asarray(x, jnp.bfloat16)
    w_bf = jnp.asarray(w_wide, jnp.bfloat16)
    sid_j = jnp.asarray(sid)
    b_row_j = jnp.asarray(b_row)

    xfrm = transform_forward(x_bf, w_bf, sid_j, b_row_j, num_spaces=S,
                             ds_pad=ds_pad, tile_n=tile_n, vmem_cap=vmem_cap)

    # --- fused avg-pool + head/tail gather as ONE difference matrix -----------
    # Subtract in f32 *before* the bf16 cast (avoids cancellation error).
    a_diff = np.zeros((b_pad, n_pad), np.float32)
    for b in range(B):
        a_diff[b, :N] = (pool_a[ent_pos[int(heads_np[b])]]
                         - pool_a[ent_pos[int(tails_np[b])]])
    a_diff_bf = jnp.asarray(a_diff, jnp.bfloat16)

    # --- relation embeddings split into structural / time parts ---------------
    rel_full = np.asarray(params["rel_embs"])[np.asarray(rels, np.int64)]
    r_s = np.zeros((b_pad, ds_pad), np.float32)
    r_s[:B, :s_dim] = rel_full[:, :s_dim]
    r_t = np.zeros((b_pad, t_dim), np.float32)
    r_t[:B] = rel_full[:, s_dim:]

    # --- diachronic params: [head y|m|d | (-)tail y|m|d], dates pre-broadcast -
    def g(name, idx):
        return np.asarray(params[name])[idx]

    hidx = heads_np.astype(np.int64)
    tidx = tails_np.astype(np.int64)
    d6 = 6 * t_dim
    amp6 = np.zeros((b_pad, d6), np.float32)
    freq6 = np.zeros((b_pad, d6), np.float32)
    phi6 = np.zeros((b_pad, d6), np.float32)
    dates6 = np.zeros((b_pad, d6), np.float32)
    amp6[:B] = np.concatenate(
        [g("y_amp", hidx), g("m_amp", hidx), g("d_amp", hidx),
         -g("y_amp", tidx), -g("m_amp", tidx), -g("d_amp", tidx)], axis=1)
    freq6[:B] = np.concatenate(
        [g("y_freq", hidx), g("m_freq", hidx), g("d_freq", hidx),
         g("y_freq", tidx), g("m_freq", tidx), g("d_freq", tidx)], axis=1)
    phi6[:B] = np.concatenate(
        [g("y_phi", hidx), g("m_phi", hidx), g("d_phi", hidx),
         g("y_phi", tidx), g("m_phi", tidx), g("d_phi", tidx)], axis=1)
    yv = np.asarray(years, np.float32)[:, None]
    mv = np.asarray(months, np.float32)[:, None]
    dv = np.asarray(days, np.float32)[:, None]
    ymd_blk = np.concatenate([np.repeat(yv, t_dim, 1),
                              np.repeat(mv, t_dim, 1),
                              np.repeat(dv, t_dim, 1)], axis=1)
    dates6[:B] = np.concatenate([ymd_blk, ymd_blk], axis=1)

    r_s_j = jnp.asarray(r_s)
    r_t_j = jnp.asarray(r_t)
    amp6_j = jnp.asarray(amp6)
    freq6_j = jnp.asarray(freq6)
    phi6_j = jnp.asarray(phi6)
    dates6_j = jnp.asarray(dates6)

    scores_row = score_forward(a_diff_bf, xfrm, r_s_j, r_t_j, amp6_j, freq6_j,
                               phi6_j, dates6_j, t_dim=t_dim, tile_b=tile_b,
                               tile_nk=tile_nk, vmem_cap=vmem_cap)   # (1, b_pad)
    scores = scores_row[0, :B]

    aux = (x_bf, w_bf, sid_j, b_row_j, a_diff_bf, r_s_j, r_t_j,
           amp6_j, freq6_j, phi6_j, dates6_j, ds_pad, t_dim, S, B)
    return scores, aux


def reference_scores(aux):
    """Pure-jnp reference of the same math (bf16 input quantization mirrored)."""
    (x_bf, w_bf, sid, b_row, a_diff_bf, r_s, r_t, amp6, freq6, phi6, dates6,
     ds_pad, t_dim, S, B) = aux
    x = x_bf.astype(jnp.float32)
    w = w_bf.astype(jnp.float32)
    z = x @ w
    sel = jnp.zeros((x.shape[0], ds_pad), jnp.float32)
    for s in range(S):
        sel = sel + jnp.where(sid == s, z[:, s * ds_pad:(s + 1) * ds_pad], 0.0)
    xf = jnp.maximum(sel + b_row, 0.0).astype(jnp.bfloat16).astype(jnp.float32)
    diff_s = a_diff_bf.astype(jnp.float32) @ xf + r_s
    tcomb = amp6 * jnp.sin(freq6 * dates6 + phi6)
    diff_t = r_t
    for c in range(6):
        diff_t = diff_t + tcomb[:, c * t_dim:(c + 1) * t_dim]
    sq = jnp.sum(diff_s * diff_s, axis=1) + jnp.sum(diff_t * diff_t, axis=1)
    return (-jnp.sqrt(sq))[:B]


# ----------------------------------------------------------------------------
if __name__ == "__main__":
    # Synthetic "dataset" / hyper-params (small, consistent with the module).
    num_ent, num_rel = 6, 3
    s_dim, t_dim = 32, 16
    train_triples = [(0, 0, 1), (0, 1, 2), (1, 2, 3), (2, 0, 3),
                     (3, 1, 4), (4, 2, 0), (2, 2, 5), (5, 0, 1)]
    # degrees <= num_neighbor_samples (=4) so get_context never random-samples.

    key = jax.random.PRNGKey(0)
    ks = jax.random.split(key, 20)
    # WH/WT are the (in, out) matrices applied as x @ W (naming convention;
    # weights are synthesized here, not loaded from a torch checkpoint).
    params = {
        "ent_embs": xavier_uniform(ks[0], (num_ent, s_dim)),
        "rel_embs": xavier_uniform(ks[1], (num_rel, s_dim + t_dim)),
        "y_amp": xavier_uniform(ks[2], (num_ent, t_dim)),
        "y_freq": xavier_uniform(ks[3], (num_ent, t_dim)),
        "y_phi": xavier_uniform(ks[4], (num_ent, t_dim)),
        "m_amp": xavier_uniform(ks[5], (num_ent, t_dim)),
        "m_freq": xavier_uniform(ks[6], (num_ent, t_dim)),
        "m_phi": xavier_uniform(ks[7], (num_ent, t_dim)),
        "d_amp": xavier_uniform(ks[8], (num_ent, t_dim)),
        "d_freq": xavier_uniform(ks[9], (num_ent, t_dim)),
        "d_phi": xavier_uniform(ks[10], (num_ent, t_dim)),
        "WH": [xavier_uniform(ks[11 + j], (s_dim, s_dim)) for j in range(num_rel)],
        "bH": [jnp.zeros((s_dim,), jnp.float32) for _ in range(num_rel)],
        "WT": [xavier_uniform(ks[14 + j], (s_dim, s_dim)) for j in range(num_rel)],
        "bT": [jnp.zeros((s_dim,), jnp.float32) for _ in range(num_rel)],
    }

    # Batch of facts (B = 4).
    heads = np.array([0, 2, 3, 5], np.int32)
    rels = np.array([0, 1, 2, 0], np.int32)
    tails = np.array([1, 3, 4, 1], np.int32)
    years = np.array([2014., 2015., 2016., 2014.], np.float32)
    months = np.array([1., 2., 3., 4.], np.float32)
    days = np.array([5., 6., 7., 8.], np.float32)

    scores, aux = de_sgraph_forward(params, heads, rels, tails,
                                    years, months, days,
                                    train_triples, num_rel, s_dim, t_dim)
    scores = jax.block_until_ready(scores)

    ref = jax.block_until_ready(reference_scores(aux))
    np.testing.assert_allclose(np.asarray(scores), np.asarray(ref),
                               rtol=2e-3, atol=2e-3)
    print("KERNEL_OK")
</pallas_src>

<mosaic_0001>
module attributes {stable_mosaic.version = 11 : i64} {
  func.func @_transform_kernel(%arg0: i32, %arg1: memref<128x32xbf16, #tpu.memory_space<vmem>>, %arg2: memref<32x768xbf16, #tpu.memory_space<vmem>>, %arg3: memref<128x1xi32, #tpu.memory_space<vmem>>, %arg4: memref<128x128xf32, #tpu.memory_space<vmem>>, %arg5: memref<128x128xbf16, #tpu.memory_space<vmem>>) attributes {dimension_semantics = [#tpu.dimension_semantics<parallel>], iteration_bounds = array<i64: 1>, scalar_prefetch = 0 : i64, scratch_operands = 0 : i64, tpu.core_type = #tpu.core_type<tc>, window_params = [{transform_indices = @transform_0, window_bounds = array<i64: 128, 32>}, {pipeline_mode = #tpu.pipeline_mode<synchronous>, transform_indices = @transform_1, window_bounds = array<i64: 32, 768>}, {transform_indices = @transform_2, window_bounds = array<i64: 128, 1>}, {transform_indices = @transform_3, window_bounds = array<i64: 128, 128>}, {transform_indices = @transform_4, window_bounds = array<i64: 128, 128>}]} {
    %c0 = arith.constant 0 : index
    %c0_0 = arith.constant 0 : index
    %0 = vector.load %arg1[%c0, %c0_0] : memref<128x32xbf16, #tpu.memory_space<vmem>>, vector<128x32xbf16>
    %c0_1 = arith.constant 0 : index
    %c0_2 = arith.constant 0 : index
    %1 = vector.load %arg2[%c0_1, %c0_2] : memref<32x768xbf16, #tpu.memory_space<vmem>>, vector<32x768xbf16>
    %cst = arith.constant dense<0.000000e+00> : vector<128x768xf32>
    %2 = tpu.matmul %0, %1, %cst {dimension_numbers = #tpu.dot_dimension_numbers<[1], [0], [0], [1], [0, 0, 1, 1], [], []>} : vector<128x32xbf16>, vector<32x768xbf16>, vector<128x768xf32> -> vector<128x768xf32>
    %c0_3 = arith.constant 0 : index
    %c0_4 = arith.constant 0 : index
    %3 = vector.load %arg3[%c0_3, %c0_4] : memref<128x1xi32, #tpu.memory_space<vmem>>, vector<128x1xi32>
    %c0_i32 = arith.constant 0 : i32
    %4 = vector.broadcast %c0_i32 : i32 to vector<128x1xi32>
    %5 = arith.cmpi eq, %3, %4 : vector<128x1xi32>
    %6 = vector.extract_strided_slice %2 {offsets = [0, 0], sizes = [128, 128], strides = [1, 1]} : vector<128x768xf32> to vector<128x128xf32>
    %cst_5 = arith.constant 0.000000e+00 : f32
    %7 = vector.shape_cast %5 : vector<128x1xi1> to vector<128x1xi1>
    %8 = vector.broadcast %7 : vector<128x1xi1> to vector<128x128xi1>
    %9 = vector.broadcast %cst_5 : f32 to vector<128x128xf32>
    %10 = arith.select %8, %6, %9 : vector<128x128xi1>, vector<128x128xf32>
    %c1_i32 = arith.constant 1 : i32
    %11 = vector.broadcast %c1_i32 : i32 to vector<128x1xi32>
    %12 = arith.cmpi eq, %3, %11 : vector<128x1xi32>
    %13 = vector.extract_strided_slice %2 {offsets = [0, 128], sizes = [128, 128], strides = [1, 1]} : vector<128x768xf32> to vector<128x128xf32>
    %cst_6 = arith.constant 0.000000e+00 : f32
    %14 = vector.shape_cast %12 : vector<128x1xi1> to vector<128x1xi1>
    %15 = vector.broadcast %14 : vector<128x1xi1> to vector<128x128xi1>
    %16 = vector.broadcast %cst_6 : f32 to vector<128x128xf32>
    %17 = arith.select %15, %13, %16 : vector<128x128xi1>, vector<128x128xf32>
    %18 = arith.addf %10, %17 : vector<128x128xf32>
    %c2_i32 = arith.constant 2 : i32
    %19 = vector.broadcast %c2_i32 : i32 to vector<128x1xi32>
    %20 = arith.cmpi eq, %3, %19 : vector<128x1xi32>
    %21 = vector.extract_strided_slice %2 {offsets = [0, 256], sizes = [128, 128], strides = [1, 1]} : vector<128x768xf32> to vector<128x128xf32>
    %cst_7 = arith.constant 0.000000e+00 : f32
    %22 = vector.shape_cast %20 : vector<128x1xi1> to vector<128x1xi1>
    %23 = vector.broadcast %22 : vector<128x1xi1> to vector<128x128xi1>
    %24 = vector.broadcast %cst_7 : f32 to vector<128x128xf32>
    %25 = arith.select %23, %21, %24 : vector<128x128xi1>, vector<128x128xf32>
    %26 = arith.addf %18, %25 : vector<128x128xf32>
    %c3_i32 = arith.constant 3 : i32
    %27 = vector.broadcast %c3_i32 : i32 to vector<128x1xi32>
    %28 = arith.cmpi eq, %3, %27 : vector<128x1xi32>
    %29 = vector.extract_strided_slice %2 {offsets = [0, 384], sizes = [128, 128], strides = [1, 1]} : vector<128x768xf32> to vector<128x128xf32>
    %cst_8 = arith.constant 0.000000e+00 : f32
    %30 = vector.shape_cast %28 : vector<128x1xi1> to vector<128x1xi1>
    %31 = vector.broadcast %30 : vector<128x1xi1> to vector<128x128xi1>
    %32 = vector.broadcast %cst_8 : f32 to vector<128x128xf32>
    %33 = arith.select %31, %29, %32 : vector<128x128xi1>, vector<128x128xf32>
    %34 = arith.addf %26, %33 : vector<128x128xf32>
    %c4_i32 = arith.constant 4 : i32
    %35 = vector.broadcast %c4_i32 : i32 to vector<128x1xi32>
    %36 = arith.cmpi eq, %3, %35 : vector<128x1xi32>
    %37 = vector.extract_strided_slice %2 {offsets = [0, 512], sizes = [128, 128], strides = [1, 1]} : vector<128x768xf32> to vector<128x128xf32>
    %cst_9 = arith.constant 0.000000e+00 : f32
    %38 = vector.shape_cast %36 : vector<128x1xi1> to vector<128x1xi1>
    %39 = vector.broadcast %38 : vector<128x1xi1> to vector<128x128xi1>
    %40 = vector.broadcast %cst_9 : f32 to vector<128x128xf32>
    %41 = arith.select %39, %37, %40 : vector<128x128xi1>, vector<128x128xf32>
    %42 = arith.addf %34, %41 : vector<128x128xf32>
    %c5_i32 = arith.constant 5 : i32
    %43 = vector.broadcast %c5_i32 : i32 to vector<128x1xi32>
    %44 = arith.cmpi eq, %3, %43 : vector<128x1xi32>
    %45 = vector.extract_strided_slice %2 {offsets = [0, 640], sizes = [128, 128], strides = [1, 1]} : vector<128x768xf32> to vector<128x128xf32>
    %cst_10 = arith.constant 0.000000e+00 : f32
    %46 = vector.shape_cast %44 : vector<128x1xi1> to vector<128x1xi1>
    %47 = vector.broadcast %46 : vector<128x1xi1> to vector<128x128xi1>
    %48 = vector.broadcast %cst_10 : f32 to vector<128x128xf32>
    %49 = arith.select %47, %45, %48 : vector<128x128xi1>, vector<128x128xf32>
    %50 = arith.addf %42, %49 : vector<128x128xf32>
    %c0_11 = arith.constant 0 : index
    %c0_12 = arith.constant 0 : index
    %51 = vector.load %arg4[%c0_11, %c0_12] : memref<128x128xf32, #tpu.memory_space<vmem>>, vector<128x128xf32>
    %52 = arith.addf %50, %51 : vector<128x128xf32>
    %cst_13 = arith.constant 0.000000e+00 : f32
    %53 = vector.broadcast %cst_13 : f32 to vector<128x128xf32>
    %54 = arith.maximumf %52, %53 : vector<128x128xf32>
    %55 = arith.truncf %54 : vector<128x128xf32> to vector<128x128xbf16>
    %c0_14 = arith.constant 0 : index
    %c0_15 = arith.constant 0 : index
    %56 = vector.load %arg5[%c0_14, %c0_15] : memref<128x128xbf16, #tpu.memory_space<vmem>>, vector<128x128xbf16>
    tpu.vector_store %arg5[%c0_14, %c0_15], %55 {strides = array<i32>} : memref<128x128xbf16, #tpu.memory_space<vmem>>, vector<128x128xbf16>,
    return
  }
  func.func @transform_0(%arg0: i32) -> (i32, i32) {
    %c0_i32 = arith.constant 0 : i32
    %c0_i32_0 = arith.constant 0 : i32
    return %arg0, %c0_i32 : i32, i32
  }
  func.func @transform_1(%arg0: i32) -> (i32, i32) {
    %c0_i32 = arith.constant 0 : i32
    %c0_i32_0 = arith.constant 0 : i32
    %c0_i32_1 = arith.constant 0 : i32
    return %c0_i32, %c0_i32_0 : i32, i32
  }
  func.func @transform_2(%arg0: i32) -> (i32, i32) {
    %c0_i32 = arith.constant 0 : i32
    %c0_i32_0 = arith.constant 0 : i32
    return %arg0, %c0_i32 : i32, i32
  }
  func.func @transform_3(%arg0: i32) -> (i32, i32) {
    %c0_i32 = arith.constant 0 : i32
    %c0_i32_0 = arith.constant 0 : i32
    return %arg0, %c0_i32 : i32, i32
  }
  func.func @transform_4(%arg0: i32) -> (i32, i32) {
    %c0_i32 = arith.constant 0 : i32
    %c0_i32_0 = arith.constant 0 : i32
    return %arg0, %c0_i32 : i32, i32
  }
}

</mosaic_0001>

<bundles_post_ra>
// kernel: tpu_custom_call.1
= control target key start
LH: loop header
LB: loop body
LE: loop exit
PB: predicated region body
PF: predicated region fallthrough
CT: control target
= control target key end

     0   :  { %9 = vsyncpa [#allocation3], 0  ;;  %s2523_s0 = inlined_call_operand.vmem [shape: bf16[128,32], index: 0, kind: input, shape index: {}]   ;;  %s2524_s1 = inlined_call_operand.hbm [shape: bf16[32,768], index: 1, kind: input, shape index: {}]   ;;  %s2525_s2 = inlined_call_operand.vmem [shape: s32[128,1], index: 2, kind: input, shape index: {}]   ;;  %s2526_s3 = inlined_call_operand.vmem [shape: f32[128,128], index: 3, kind: input, shape index: {}]   ;;  %s2527_s4 = inlined_call_operand.hbm [shape: bf16[128,128], index: 4, kind: output, shape index: {}]  }
   0x1   :  { %10 = vsyncpa [#allocation4], 0  ;;  %s1648_s15 = smov [#allocation2]   ;;  %s1600_s19 = scalar_lea.hbm %s2524_s1, 1536 }
   0x2   :  { %s18_s16 = sshll.u32 %s1648_s15, 4  ;;  %p1601_p0 = scmp.ne.s32.totalorder %s2524_s1, %s1600_s19  ;;  %s19_s16 = int_to_ptr.vmem [resolvable:$true] %s18_s16 }
   0x3   :  { %p1604_p1 = scmp.lt.u32.totalorder %s1600_s19, %s2524_s1 }
   0x5   :  { %p1606_p2 = pnand %p1604_p1, %p1601_p0 }
   0x7   :  { %1609 = shalt.err (!%p1606_p2)
}
   0x8   :  { %s1610_s24 = scalar_lea.vmem %s19_s16, 1536  ;;  %p1615_p4 = scmp.lt.s32.totalorder %s19_s16, %s19_s16 }
   0x9   :  { %p1611_p3 = scmp.ne.s32.totalorder %s19_s16, %s1610_s24  ;;  %p1616_p5 = scmp.lt.s32.totalorder %s1610_s24, %s1610_s24 }
   0xb   :  { %p1617_p6 = por %p1616_p5, %p1615_p4 }
   0xd   :  { %p1618_p7 = pnand %p1617_p6, %p1611_p3 }
   0xf   :  { %1621 = shalt.err (!%p1618_p7)
}
  0x10   :  { %s1649_s25 = smov 384   ;;  %s1650_s26 = smov 24  }
  0x11   :  { %24 = dma.hbm_to_vmem [thread:$0]  %s2524_s1, 1536, %s19_s16, [#allocation3], %s1649_s25, %s1649_s25, %s1650_s26  }
  0x12   :  { %1644 = dma.done.wait [#allocation3], 1536  }
  0x13   :  { %1645 = vsyncadd [#allocation3], 4294965760  ;;  %v1651_v0 = vmov 0   ;;  %v1699_v1 = vld [vmem:[%s2525_s2 + $0x10] sm:$0xff]  ;;  %v1704_v2 = vld [vmem:[%s2525_s2] sm:$0xff]  ;;  %vm161_vm6 = vcmask 261120  }
  0x14   :  { %1573 = vset.pattern.permute.xlu1 %v1651_v0  ;;  %1572 = vset.pattern.permute.xlu0 %v1651_v0  ;;  %vm543_vm0 = vcmp.eq.s32.totalorder %v1699_v1, 0  ;;  %vm541_vm1 = vcmp.eq.s32.totalorder %v1704_v2, 0  ;;  %v1574_v3 = vld [vmem:[#allocation2 + $0x4] ss:$24 sps:$4 sm:$0xff]   ;;  %v1576_v7 = vld [vmem:[#allocation2] ss:$24 sps:$4 sm:$0xff]  }
  0x15   :  { %218 = vmatprep.mubr.bf16.mxu0 %v1651_v0  ;;  %258 = vmatprep.mubr.bf16.mxu1 %v1651_v0  ;;  %v1711_v4 = vld [vmem:[%s2525_s2 + $0x18] sm:$0xff]  ;;  %v559_v5 = vsel %vm543_vm0, 1, %v1651_v0  ;;  %v557_v6 = vsel %vm541_vm1, 1, %v1651_v0  ;;  %v1719_v8 = vld [vmem:[%s2525_s2 + $0x8] sm:$0xff]  ;;  %v1732_v14 = vld [vmem:[%s2525_s2 + $0x20] sm:$0xff]  ;;  %s1652_s24 = smov [#allocation5]  }
  0x16   :  { %vm544_vm2 = vcmp.eq.s32.totalorder %v1711_v4, 0  ;;  %580 = vperm.xlu1 %1573, %v559_v5   ;;  %574 = vperm.xlu0 %1572, %v557_v6   ;;  %vm542_vm3 = vcmp.eq.s32.totalorder %v1719_v8, 0  ;;  %v1577_v9 = vld [vmem:[#allocation2 + $0x34] ss:$24 sps:$4 sm:$0xff]   ;;  %v1579_v12 = vld [vmem:[#allocation2 + $0x30] ss:$24 sps:$4 sm:$0xff]  }
  0x17   :  { %186 = vmatprep.subr.bf16.mxu0 %v1574_v3  ;;  %1561 = vmatprep.subr.bf16.mxu1 %v1574_v3  ;;  %v560_v10 = vsel %vm544_vm2, 1, %v1651_v0  ;;  %v558_v11 = vsel %vm542_vm3, 1, %v1651_v0  ;;  %v1727_v13 = vld [vmem:[%s2525_s2 + $0x28] sm:$0xff]  ;;  %vm545_vm5 = vcmp.eq.s32.totalorder %v1732_v14, 0  ;;  %v1739_v15 = vld [vmem:[%s2523_s0] sm:$0xff]   ;;  %v1751_v21 = vld [vmem:[%s2525_s2 + $0x38] sm:$0xff] }
  0x18   :  { %187 = vmatpush1.bf16.msra.mxu0 %v1576_v7  ;;  %1563 = vmatpush1.bf16.msra.mxu1 %v1576_v7  ;;  %vm546_vm4 = vcmp.eq.s32.totalorder %v1727_v13, 0  ;;  %v1744_v16 = vld [vmem:[%s2523_s0 + $0x20] sm:$0xff]   ;;  %v561_v18 = vsel %vm545_vm5, 1, %v1651_v0  ;;  %vm548_vm7 = vcmp.eq.s32.totalorder %v1751_v21, 0  ;;  %v1757_v22 = vld [vmem:[%s2525_s2 + $0x30] sm:$0xff]  ;;  %v1763_v25 = vld [vmem:[%s2525_s2 + $0x48] sm:$0xff] }
  0x19   :  { %188 = vmatprep.subr.bf16.mxu0 %v1577_v9  ;;  %1562 = vmatprep.subr.bf16.mxu1 %v1577_v9  ;;  %v562_v17 = vsel %vm546_vm4, 1, %v1651_v0  ;;  %v1582_v19 = vld [vmem:[#allocation2 + $0x8] ss:$24 sps:$4 sm:$0xff]   ;;  %v1584_v20 = vld [vmem:[#allocation2 + $0xc] ss:$24 sps:$4 sm:$0xff]   ;;  %vm547_vm8 = vcmp.eq.s32.totalorder %v1757_v22, 0 }
  0x1a   :  { %583 = vperm.xlu1 %1573, %v560_v10   ;;  %577 = vperm.xlu0 %1572, %v558_v11   ;;  %v1585_v23 = vld [vmem:[#allocation2 + $0x10] ss:$24 sps:$4 sm:$0xff]   ;;  %v1587_v24 = vld [vmem:[#allocation2 + $0x14] ss:$24 sps:$4 sm:$0xff]   ;;  %v1768_v26 = vld [vmem:[%s2525_s2 + $0x40] sm:$0xff]  ;;  %v564_v27 = vsel %vm548_vm7, 1, %v1651_v0 }
  0x1b   :  { %v563_v28 = vsel %vm547_vm8, 1, %v1651_v0  ;;  %vm550_vm9 = vcmp.eq.s32.totalorder %v1763_v25, 0  ;;  %vm549_vm10 = vcmp.eq.s32.totalorder %v1768_v26, 0  ;;  %v1782_v29 = vld [vmem:[%s2525_s2 + $0x58] sm:$0xff]  ;;  %v1787_v30 = vld [vmem:[%s2525_s2 + $0x50] sm:$0xff]  ;;  %v1792_v31 = vld [vmem:[%s2523_s0 + $0x8] sm:$0xff]  }
  0x1c   :  { %189 = vmatpush1.bf16.msra.mxu0 %v1579_v12  ;;  %1564 = vmatpush1.bf16.msra.mxu1 %v1579_v12  ;;  %v566_v32 = vsel %vm550_vm9, 1, %v1651_v0  ;;  %v565_v33 = vsel %vm549_vm10, 1, %v1651_v0  ;;  %v1800_v34 = vld [vmem:[%s2523_s0 + $0x28] sm:$0xff]   ;;  %vm552_vm11 = vcmp.eq.s32.totalorder %v1782_v29, 0  ;;  %vm551_vm12 = vcmp.eq.s32.totalorder %v1787_v30, 0  ;;  %v1812_v36 = vld [vmem:[%s2525_s2 + $0x60] sm:$0xff] }
  0x1d   :  { %299 = vmatprep.subr.bf16.mxu1 %v1584_v20  ;;  %412 = vmatprep.subr.bf16.mxu0 %v1587_v24  ;;  %v1805_v35 = vld [vmem:[%s2525_s2 + $0x68] sm:$0xff]  ;;  %v1594_v37 = vld [vmem:[#allocation2 + $0x3c] ss:$24 sps:$4 sm:$0xff]   ;;  %v568_v38 = vsel %vm552_vm11, 1, %v1651_v0  ;;  %v567_v39 = vsel %vm551_vm12, 1, %v1651_v0  ;;  %vm553_vm14 = vcmp.eq.s32.totalorder %v1812_v36, 0 }
  0x1e   :  { %589 = vperm.xlu1 %1573, %v562_v17   ;;  %586 = vperm.xlu0 %1572, %v561_v18   ;;  %vm554_vm13 = vcmp.eq.s32.totalorder %v1805_v35, 0  ;;  %v1592_v40 = vld [vmem:[#allocation2 + $0x38] ss:$24 sps:$4 sm:$0xff]   ;;  %v1597_v43 = vld [vmem:[#allocation2 + $0x44] ss:$24 sps:$4 sm:$0xff]   ;;  %v569_v46 = vsel %vm553_vm14, 1, %v1651_v0 }
  0x1f   :  { %1458 = vmatmul.mubr.msk.bf16.vlgmr.msra.gmra.mrb[0].mxu0 %vm161_vm6, %v1739_v15  ;;  %1462 = vmatmul.mubr.msk.bf16.vlgmr.msra.gmra.mrb[0].mxu1 %vm161_vm6, %v1744_v16  ;;  %v1827_v41 = vld [vmem:[%s2525_s2 + $0x78] sm:$0xff]  ;;  %v1832_v44 = vld [vmem:[%s2525_s2 + $0x70] sm:$0xff]  ;;  %v570_v45 = vsel %vm554_vm13, 1, %v1651_v0  ;;  %vm654_vm1 = vcmp.eq.s32.totalorder %v1719_v8, 1  ;;  %vm653_vm2 = vcmp.eq.s32.totalorder %v1704_v2, 1  ;;  %vm656_vm3 = vcmp.eq.s32.totalorder %v1711_v4, 1 }
  0x20   :  { %300 = vmatpush1.bf16.msra.mxu1 %v1582_v19  ;;  %413 = vmatpush1.bf16.msra.mxu0 %v1585_v23  ;;  %v1595_v42 = vld [vmem:[#allocation2 + $0x40] ss:$24 sps:$4 sm:$0xff]   ;;  %v1841_v47 = vld [vmem:[%s2523_s0 + $0x10] sm:$0xff]   ;;  %vm556_vm15 = vcmp.eq.s32.totalorder %v1827_v41, 0  ;;  %vm555_vm0 = vcmp.eq.s32.totalorder %v1832_v44, 0  ;;  %v670_v51 = vsel %vm654_vm1, 1, %v1651_v0 }
  0x21   :  { %228 = vmatprep.mubr.bf16.mxu0 %v1651_v0  ;;  %268 = vmatprep.mubr.bf16.mxu1 %v1651_v0  ;;  %v1846_v48 = vld [vmem:[%s2523_s0 + $0x30] sm:$0xff]   ;;  %v572_v49 = vsel %vm556_vm15, 1, %v1651_v0  ;;  %v571_v50 = vsel %vm555_vm0, 1, %v1651_v0  ;;  %v669_v52 = vsel %vm653_vm2, 1, %v1651_v0  ;;  %v1865_v53 = vld [vmem:[%s2523_s0 + $0x18] sm:$0xff]   ;;  %vm655_vm4 = vcmp.eq.s32.totalorder %v1699_v1, 1 }
  0x22   :  { %595 = vperm.xlu1 %1573, %v564_v27   ;;  %592 = vperm.xlu0 %1572, %v563_v28   ;;  %v1870_v54 = vld [vmem:[%s2523_s0 + $0x38] sm:$0xff]   ;;  %v672_v55 = vsel %vm656_vm3, 1, %v1651_v0  ;;  %v671_v56 = vsel %vm655_vm4, 1, %v1651_v0  ;;  %vm658_vm5 = vcmp.eq.s32.totalorder %v1727_v13, 1  ;;  %vm657_vm7 = vcmp.eq.s32.totalorder %v1732_v14, 1  ;;  %s1426_s25 = sshll.u32 %s1652_s24, 4  ;;  %s1427_s25 = int_to_ptr.vmem [resolvable:$true] %s1426_s25 }
  0x23   :  { %301 = vmatprep.subr.bf16.mxu1 %v1594_v37  ;;  %414 = vmatprep.subr.bf16.mxu0 %v1597_v43  ;;  %v674_v57 = vsel %vm658_vm5, 1, %v1651_v0  ;;  %v673_v58 = vsel %vm657_vm7, 1, %v1651_v0  ;;  %vm660_vm8 = vcmp.eq.s32.totalorder %v1751_v21, 1  ;;  %vm659_vm9 = vcmp.eq.s32.totalorder %v1757_v22, 1  ;;  %s1622_s26 = scalar_lea.vmem %s1427_s25, 1024  ;;  %p1627_p9 = scmp.lt.s32.totalorder %s1427_s25, %s1427_s25 }
  0x24   :  { %302 = vmatpush1.bf16.msra.mxu1 %v1592_v40  ;;  %415 = vmatpush1.bf16.msra.mxu0 %v1595_v42  ;;  %v676_v59 = vsel %vm660_vm8, 1, %v1651_v0  ;;  %v675_v60 = vsel %vm659_vm9, 1, %v1651_v0  ;;  %vm662_vm10 = vcmp.eq.s32.totalorder %v1763_v25, 1  ;;  %vm661_vm11 = vcmp.eq.s32.totalorder %v1768_v26, 1  ;;  %p1623_p8 = scmp.ne.s32.totalorder %s1427_s25, %s1622_s26  ;;  %p1628_p10 = scmp.lt.s32.totalorder %s1622_s26, %s1622_s26 }
  0x25   :  { %v678_v61 = vsel %vm662_vm10, 1, %v1651_v0  ;;  %v677_v62 = vsel %vm661_vm11, 1, %v1651_v0  ;;  %vm664_vm12 = vcmp.eq.s32.totalorder %v1782_v29, 1  ;;  %vm663_vm13 = vcmp.eq.s32.totalorder %v1787_v30, 1 }
  0x26   :  { %601 = vperm.xlu1 %1573, %v566_v32   ;;  %598 = vperm.xlu0 %1572, %v565_v33   ;;  %v680_v63 = vsel %vm664_vm12, 1, %v1651_v0  ;;  %v679_v3 = vsel %vm663_vm13, 1, %v1651_v0  ;;  %vm666_vm14 = vcmp.eq.s32.totalorder %v1805_v35, 1  ;;  %vm665_vm15 = vcmp.eq.s32.totalorder %v1812_v36, 1  ;;  %p1629_p11 = por %p1628_p10, %p1627_p9 }
  0x27   :  { %1459 = vmatmul.mubr.msk.bf16.gmra.mrb[4].mxu0 %vm161_vm6, %v1792_v31  ;;  %1463 = vmatmul.mubr.msk.bf16.gmra.mrb[4].mxu1 %vm161_vm6, %v1800_v34  ;;  %v682_v5 = vsel %vm666_vm14, 1, %v1651_v0  ;;  %v681_v6 = vsel %vm665_vm15, 1, %v1651_v0  ;;  %vm668_vm0 = vcmp.eq.s32.totalorder %v1827_v41, 1  ;;  %vm667_vm1 = vcmp.eq.s32.totalorder %v1832_v44, 1 }
  0x28   :  { %238 = vmatprep.mubr.bf16.mxu0 %v1651_v0  ;;  %278 = vmatprep.mubr.bf16.mxu1 %v1651_v0  ;;  %v684_v7 = vsel %vm668_vm0, 1, %v1651_v0  ;;  %v683_v9 = vsel %vm667_vm1, 1, %v1651_v0  ;;  %vm782_vm2 = vcmp.eq.s32.totalorder %v1719_v8, 2  ;;  %vm781_vm3 = vcmp.eq.s32.totalorder %v1704_v2, 2  ;;  %p1630_p12 = pnand %p1629_p11, %p1623_p8 }
  0x29   :  { %v798_v10 = vsel %vm782_vm2, 1, %v1651_v0  ;;  %v797_v11 = vsel %vm781_vm3, 1, %v1651_v0  ;;  %vm784_vm4 = vcmp.eq.s32.totalorder %v1711_v4, 2  ;;  %vm783_vm5 = vcmp.eq.s32.totalorder %v1699_v1, 2 }
  0x2a   :  { %607 = vperm.xlu1 %1573, %v568_v38   ;;  %604 = vperm.xlu0 %1572, %v567_v39   ;;  %v800_v12 = vsel %vm784_vm4, 1, %v1651_v0  ;;  %vm786_vm7 = vcmp.eq.s32.totalorder %v1727_v13, 2  ;;  %vm785_vm8 = vcmp.eq.s32.totalorder %v1732_v14, 2  ;;  %vm788_vm9 = vcmp.eq.s32.totalorder %v1751_v21, 2 }
  0x2b   :  { %v802_v17 = vsel %vm786_vm7, 1, %v1651_v0  ;;  %v801_v18 = vsel %vm785_vm8, 1, %v1651_v0  ;;  %vm787_vm10 = vcmp.eq.s32.totalorder %v1757_v22, 2  ;;  %v804_v19 = vsel %vm788_vm9, 1, %v1651_v0 }
  0x2c   :  { %v803_v20 = vsel %vm787_vm10, 1, %v1651_v0  ;;  %vm790_vm11 = vcmp.eq.s32.totalorder %v1763_v25, 2  ;;  %vm789_vm12 = vcmp.eq.s32.totalorder %v1768_v26, 2  ;;  %vm792_vm13 = vcmp.eq.s32.totalorder %v1782_v29, 2 }
  0x2d   :  { %v806_v23 = vsel %vm790_vm11, 1, %v1651_v0  ;;  %v805_v24 = vsel %vm789_vm12, 1, %v1651_v0  ;;  %vm791_vm14 = vcmp.eq.s32.totalorder %v1787_v30, 2  ;;  %vm794_vm15 = vcmp.eq.s32.totalorder %v1805_v35, 2 }
  0x2e   :  { %613 = vperm.xlu1 %1573, %v570_v45   ;;  %610 = vperm.xlu0 %1572, %v569_v46   ;;  %v807_v27 = vsel %vm791_vm14, 1, %v1651_v0  ;;  %vm793_vm0 = vcmp.eq.s32.totalorder %v1812_v36, 2  ;;  %v810_v28 = vsel %vm794_vm15, 1, %v1651_v0  ;;  %vm796_vm1 = vcmp.eq.s32.totalorder %v1827_v41, 2 }
  0x2f   :  { %1460 = vmatmul.mubr.msk.bf16.gmra.mrb[8].mxu0 %vm161_vm6, %v1841_v47  ;;  %1464 = vmatmul.mubr.msk.bf16.gmra.mrb[8].mxu1 %vm161_vm6, %v1846_v48  ;;  %vm795_vm2 = vcmp.eq.s32.totalorder %v1832_v44, 2  ;;  %v812_v32 = vsel %vm796_vm1, 1, %v1651_v0  ;;  %vm910_vm3 = vcmp.eq.s32.totalorder %v1719_v8, 3  ;;  %vm909_vm4 = vcmp.eq.s32.totalorder %v1704_v2, 3 }
  0x30   :  { %248 = vmatprep.mubr.bf16.mxu0 %v1651_v0  ;;  %288 = vmatprep.mubr.bf16.mxu1 %v1651_v0  ;;  %v811_v33 = vsel %vm795_vm2, 1, %v1651_v0  ;;  %v925_v37 = vsel %vm909_vm4, 1, %v1651_v0  ;;  %vm911_vm7 = vcmp.eq.s32.totalorder %v1699_v1, 3  ;;  %vm914_vm8 = vcmp.eq.s32.totalorder %v1727_v13, 3 }
  0x31   :  { %v927_v39 = vsel %vm911_vm7, 1, %v1651_v0  ;;  %vm913_vm9 = vcmp.eq.s32.totalorder %v1732_v14, 3  ;;  %v930_v40 = vsel %vm914_vm8, 1, %v1651_v0  ;;  %vm916_vm10 = vcmp.eq.s32.totalorder %v1751_v21, 3 }
  0x32   :  { %619 = vperm.xlu1 %1573, %v572_v49   ;;  %616 = vperm.xlu0 %1572, %v571_v50   ;;  %v929_v42 = vsel %vm913_vm9, 1, %v1651_v0  ;;  %vm915_vm11 = vcmp.eq.s32.totalorder %v1757_v22, 3  ;;  %v932_v43 = vsel %vm916_vm10, 1, %v1651_v0  ;;  %vm917_vm12 = vcmp.eq.s32.totalorder %v1768_v26, 3 }
  0x33   :  { %v931_v45 = vsel %vm915_vm11, 1, %v1651_v0  ;;  %vm919_vm14 = vcmp.eq.s32.totalorder %v1787_v30, 3  ;;  %vm922_vm15 = vcmp.eq.s32.totalorder %v1805_v35, 3  ;;  %vm924_vm1 = vcmp.eq.s32.totalorder %v1827_v41, 3 }
  0x34   :  { %v935_v49 = vsel %vm919_vm14, 1, %v1651_v0  ;;  %v938_v50 = vsel %vm922_vm15, 1, %v1651_v0  ;;  %vm923_vm2 = vcmp.eq.s32.totalorder %v1832_v44, 3  ;;  %vm1037_vm4 = vcmp.eq.s32.totalorder %v1704_v2, 4 }
  0x35   :  { %vm1039_vm7 = vcmp.eq.s32.totalorder %v1699_v1, 4  ;;  %vm1042_vm8 = vcmp.eq.s32.totalorder %v1727_v13, 4  ;;  %vm1041_vm9 = vcmp.eq.s32.totalorder %v1732_v14, 4  ;;  %vm1044_vm10 = vcmp.eq.s32.totalorder %v1751_v21, 4 }
  0x36   :  { %689 = vperm.xlu1 %1573, %v670_v51   ;;  %686 = vperm.xlu0 %1572, %v669_v52   ;;  %v940_v52 = vsel %vm924_vm1, 1, %v1651_v0  ;;  %vm1043_vm11 = vcmp.eq.s32.totalorder %v1757_v22, 4  ;;  %vm1047_vm14 = vcmp.eq.s32.totalorder %v1787_v30, 4  ;;  %vm1050_vm15 = vcmp.eq.s32.totalorder %v1805_v35, 4 }
  0x37   :  { %1461 = vmatmul.mubr.msk.bf16.gmra.mrb[12].mxu0 %vm161_vm6, %v1865_v53  ;;  %1465 = vmatmul.mubr.msk.bf16.gmra.mrb[12].mxu1 %vm161_vm6, %v1870_v54  ;;  %vm1052_vm1 = vcmp.eq.s32.totalorder %v1827_v41, 4 }
  0x38   :  { %331 = vmatprep.mubr.bf16.mxu1 %v1651_v0  ;;  %444 = vmatprep.mubr.bf16.mxu0 %v1651_v0 }
  0x3a   :  { %695 = vperm.xlu1 %1573, %v672_v55   ;;  %692 = vperm.xlu0 %1572, %v671_v56   ;;  %v1053_v55 = vsel %vm1037_vm4, 1, %v1651_v0  ;;  %vm1165_vm4 = vcmp.eq.s32.totalorder %v1704_v2, 5 }
  0x3e   :  { %701 = vperm.xlu1 %1573, %v674_v57   ;;  %698 = vperm.xlu0 %1572, %v673_v58  }
  0x3f   :  { %1466 = vmatmul.mubr.msk.bf16.vlgmr.msra.gmra.mrb[16].mxu1 %vm161_vm6, %v1739_v15  ;;  %1474 = vmatmul.mubr.msk.bf16.vlgmr.msra.gmra.mrb[16].mxu0 %vm161_vm6, %v1739_v15  ;;  %v799_v15 = vsel %vm783_vm5, 1, %v1651_v0  ;;  %vm912_vm5 = vcmp.eq.s32.totalorder %v1711_v4, 3 }
  0x40   :  { %341 = vmatprep.mubr.bf16.mxu1 %v1651_v0  ;;  %454 = vmatprep.mubr.bf16.mxu0 %v1651_v0  ;;  %v928_v38 = vsel %vm912_vm5, 1, %v1651_v0  ;;  %vm1040_vm5 = vcmp.eq.s32.totalorder %v1711_v4, 4 }
  0x41   :  { %v1056_v58 = vsel %vm1040_vm5, 1, %v1651_v0  ;;  %vm1168_vm5 = vcmp.eq.s32.totalorder %v1711_v4, 5 }
  0x42   :  { %707 = vperm.xlu1 %1573, %v676_v59   ;;  %704 = vperm.xlu0 %1572, %v675_v60   ;;  %v1055_v59 = vsel %vm1039_vm7, 1, %v1651_v0  ;;  %vm1167_vm7 = vcmp.eq.s32.totalorder %v1699_v1, 5  ;;  %v1184_v2 = vsel %vm1168_vm5, 1, %v1651_v0 }
  0x46   :  { %713 = vperm.xlu1 %1573, %v678_v61   ;;  %710 = vperm.xlu0 %1572, %v677_v62   ;;  %v1058_v62 = vsel %vm1042_vm8, 1, %v1651_v0  ;;  %vm1170_vm8 = vcmp.eq.s32.totalorder %v1727_v13, 5 }
  0x47   :  { %1467 = vmatmul.mubr.msk.bf16.gmra.mrb[20].mxu1 %vm161_vm6, %v1792_v31  ;;  %1475 = vmatmul.mubr.msk.bf16.gmra.mrb[20].mxu0 %vm161_vm6, %v1792_v31  ;;  %v809_v31 = vsel %vm793_vm0, 1, %v1651_v0  ;;  %vm921_vm0 = vcmp.eq.s32.totalorder %v1812_v36, 3  ;;  %v1186_v1 = vsel %vm1170_vm8, 1, %v1651_v0 }
  0x48   :  { %351 = vmatprep.mubr.bf16.mxu1 %v1651_v0  ;;  %464 = vmatprep.mubr.bf16.mxu0 %v1651_v0  ;;  %v937_v51 = vsel %vm921_vm0, 1, %v1651_v0  ;;  %vm1049_vm0 = vcmp.eq.s32.totalorder %v1812_v36, 4 }
  0x4a   :  { %719 = vperm.xlu1 %1573, %v680_v63   ;;  %716 = vperm.xlu0 %1572, %v679_v3   ;;  %v1057_v63 = vsel %vm1041_vm9, 1, %v1651_v0  ;;  %vm1169_vm9 = vcmp.eq.s32.totalorder %v1732_v14, 5 }
  0x4b   :  { %v1185_v4 = vsel %vm1169_vm9, 1, %v1651_v0 }
  0x4e   :  { %725 = vperm.xlu1 %1573, %v682_v5   ;;  %722 = vperm.xlu0 %1572, %v681_v6   ;;  %v1060_v6 = vsel %vm1044_vm10, 1, %v1651_v0  ;;  %vm1172_vm10 = vcmp.eq.s32.totalorder %v1751_v21, 5 }
  0x4f   :  { %1468 = vmatmul.mubr.msk.bf16.gmra.mrb[24].mxu1 %vm161_vm6, %v1841_v47  ;;  %1476 = vmatmul.mubr.msk.bf16.gmra.mrb[24].mxu0 %vm161_vm6, %v1841_v47  ;;  %v933_v47 = vsel %vm917_vm12, 1, %v1651_v0  ;;  %vm1045_vm12 = vcmp.eq.s32.totalorder %v1768_v26, 4  ;;  %v1188_v13 = vsel %vm1172_vm10, 1, %v1651_v0 }
  0x50   :  { %361 = vmatprep.mubr.bf16.mxu1 %v1651_v0  ;;  %474 = vmatprep.mubr.bf16.mxu0 %v1651_v0 }
  0x52   :  { %731 = vperm.xlu1 %1573, %v684_v7   ;;  %728 = vperm.xlu0 %1572, %v683_v9   ;;  %v1059_v7 = vsel %vm1043_vm11, 1, %v1651_v0  ;;  %vm1171_vm11 = vcmp.eq.s32.totalorder %v1757_v22, 5 }
  0x53   :  { %v1187_v14 = vsel %vm1171_vm11, 1, %v1651_v0 }
  0x56   :  { %817 = vperm.xlu1 %1573, %v798_v10   ;;  %814 = vperm.xlu0 %1572, %v797_v11  }
  0x57   :  { %1469 = vmatmul.mubr.msk.bf16.gmra.mrb[28].mxu1 %vm161_vm6, %v1865_v53  ;;  %1477 = vmatmul.mubr.msk.bf16.gmra.mrb[28].mxu0 %vm161_vm6, %v1865_v53  ;;  %v939_v53 = vsel %vm923_vm2, 1, %v1651_v0  ;;  %vm1051_vm2 = vcmp.eq.s32.totalorder %v1832_v44, 4 }
  0x58   :  { %371 = vmatprep.mubr.bf16.mxu1 %v1651_v0  ;;  %484 = vmatprep.mubr.bf16.mxu0 %v1651_v0 }
  0x5a   :  { %823 = vperm.xlu1 %1573, %v800_v12   ;;  %820 = vperm.xlu0 %1572, %v799_v15   ;;  %v1061_v12 = vsel %vm1045_vm12, 1, %v1651_v0  ;;  %vm1173_vm12 = vcmp.eq.s32.totalorder %v1768_v26, 5 }
  0x5b   :  { %v1189_v22 = vsel %vm1173_vm12, 1, %v1651_v0 }
  0x5e   :  { %829 = vperm.xlu1 %1573, %v802_v17   ;;  %826 = vperm.xlu0 %1572, %v801_v18  }
  0x5f   :  { %1470 = vmatmul.mubr.msk.bf16.gmra.mrb[32].mxu1 %vm161_vm6, %v1744_v16  ;;  %1478 = vmatmul.mubr.msk.bf16.gmra.mrb[32].mxu0 %vm161_vm6, %v1744_v16  ;;  %v808_v16 = vsel %vm792_vm13, 1, %v1651_v0  ;;  %vm920_vm13 = vcmp.eq.s32.totalorder %v1782_v29, 3 }
  0x60   :  { %381 = vmatprep.mubr.bf16.mxu1 %v1651_v0  ;;  %494 = vmatprep.mubr.bf16.mxu0 %v1651_v0 }
  0x62   :  { %835 = vperm.xlu1 %1573, %v804_v19   ;;  %832 = vperm.xlu0 %1572, %v803_v20   ;;  %v1063_v19 = vsel %vm1047_vm14, 1, %v1651_v0  ;;  %vm1175_vm14 = vcmp.eq.s32.totalorder %v1787_v30, 5 }
  0x63   :  { %v1191_v26 = vsel %vm1175_vm14, 1, %v1651_v0 }
  0x66   :  { %841 = vperm.xlu1 %1573, %v806_v23   ;;  %838 = vperm.xlu0 %1572, %v805_v24   ;;  %v1066_v24 = vsel %vm1050_vm15, 1, %v1651_v0  ;;  %vm1178_vm15 = vcmp.eq.s32.totalorder %v1805_v35, 5 }
  0x67   :  { %1471 = vmatmul.mubr.msk.bf16.gmra.mrb[36].mxu1 %vm161_vm6, %v1800_v34  ;;  %1479 = vmatmul.mubr.msk.bf16.gmra.mrb[36].mxu0 %vm161_vm6, %v1800_v34  ;;  %v926_v34 = vsel %vm910_vm3, 1, %v1651_v0  ;;  %vm1038_vm3 = vcmp.eq.s32.totalorder %v1719_v8, 4 }
  0x68   :  { %391 = vmatprep.mubr.bf16.mxu1 %v1651_v0  ;;  %504 = vmatprep.mubr.bf16.mxu0 %v1651_v0 }
  0x6a   :  { %847 = vperm.xlu1 %1573, %v808_v16   ;;  %844 = vperm.xlu0 %1572, %v807_v27   ;;  %v1065_v16 = vsel %vm1049_vm0, 1, %v1651_v0  ;;  %vm1177_vm0 = vcmp.eq.s32.totalorder %v1812_v36, 5 }
  0x6b   :  { %v1193_v30 = vsel %vm1177_vm0, 1, %v1651_v0 }
  0x6e   :  { %853 = vperm.xlu1 %1573, %v810_v28   ;;  %850 = vperm.xlu0 %1572, %v809_v31   ;;  %v1068_v31 = vsel %vm1052_vm1, 1, %v1651_v0  ;;  %vm1180_vm1 = vcmp.eq.s32.totalorder %v1827_v41, 5 }
  0x6f   :  { %1472 = vmatmul.mubr.msk.bf16.gmra.mrb[40].mxu1 %vm161_vm6, %v1846_v48  ;;  %1480 = vmatmul.mubr.msk.bf16.gmra.mrb[40].mxu0 %vm161_vm6, %v1846_v48  ;;  %v936_v48 = vsel %vm920_vm13, 1, %v1651_v0  ;;  %vm1048_vm13 = vcmp.eq.s32.totalorder %v1782_v29, 4  ;;  %v1196_v35 = vsel %vm1180_vm1, 1, %v1651_v0 }
  0x70   :  { %401 = vmatprep.mubr.bf16.mxu1 %v1651_v0  ;;  %514 = vmatprep.mubr.bf16.mxu0 %v1651_v0  ;;  %v1064_v18 = vsel %vm1048_vm13, 1, %v1651_v0  ;;  %vm1176_vm13 = vcmp.eq.s32.totalorder %v1782_v29, 5  ;;  %v1194_v29 = vsel %vm1178_vm15, 1, %v1651_v0 }
  0x72   :  { %859 = vperm.xlu1 %1573, %v812_v32   ;;  %856 = vperm.xlu0 %1572, %v811_v33   ;;  %v1067_v32 = vsel %vm1051_vm2, 1, %v1651_v0  ;;  %vm1179_vm2 = vcmp.eq.s32.totalorder %v1832_v44, 5 }
  0x73   :  { %v1195_v36 = vsel %vm1179_vm2, 1, %v1651_v0 }
  0x76   :  { %945 = vperm.xlu1 %1573, %v926_v34   ;;  %942 = vperm.xlu0 %1572, %v925_v37  }
  0x77   :  { %1473 = vmatmul.mubr.msk.bf16.gmra.mrb[44].mxu1 %vm161_vm6, %v1870_v54  ;;  %1481 = vmatmul.mubr.msk.bf16.gmra.mrb[44].mxu0 %vm161_vm6, %v1870_v54  ;;  %vm918_vm6 = vcmp.eq.s32.totalorder %v1763_v25, 3  ;;  %v1054_v54 = vsel %vm1038_vm3, 1, %v1651_v0  ;;  %vm1166_vm3 = vcmp.eq.s32.totalorder %v1719_v8, 5  ;;  %v1183_v8 = vsel %vm1167_vm7, 1, %v1651_v0 }
  0x78   :  { %v934_v46 = vsel %vm918_vm6, 1, %v1651_v0  ;;  %vm1046_vm6 = vcmp.eq.s32.totalorder %v1763_v25, 4  ;;  %v1182_v37 = vsel %vm1166_vm3, 1, %v1651_v0 }
  0x79   :  { %v1062_v11 = vsel %vm1046_vm6, 1, %v1651_v0  ;;  %vm1174_vm6 = vcmp.eq.s32.totalorder %v1763_v25, 5  ;;  %v1192_v25 = vsel %vm1176_vm13, 1, %v1651_v0 }
  0x7a   :  { %951 = vperm.xlu1 %1573, %v928_v38   ;;  %948 = vperm.xlu0 %1572, %v927_v39   ;;  %v1181_v38 = vsel %vm1165_vm4, 1, %v1651_v0  ;;  %v1190_v21 = vsel %vm1174_vm6, 1, %v1651_v0 }
  0x7e   :  { %957 = vperm.xlu1 %1573, %v930_v40   ;;  %954 = vperm.xlu0 %1572, %v929_v42  }
  0x82   :  { %963 = vperm.xlu1 %1573, %v932_v43   ;;  %960 = vperm.xlu0 %1572, %v931_v45  }
  0x86   :  { %969 = vperm.xlu1 %1573, %v934_v46   ;;  %966 = vperm.xlu0 %1572, %v933_v47  }
  0x8a   :  { %975 = vperm.xlu1 %1573, %v936_v48   ;;  %972 = vperm.xlu0 %1572, %v935_v49  }
  0x8e   :  { %981 = vperm.xlu1 %1573, %v938_v50   ;;  %978 = vperm.xlu0 %1572, %v937_v51  }
  0x92   :  { %987 = vperm.xlu1 %1573, %v940_v52   ;;  %984 = vperm.xlu0 %1572, %v939_v53  }
  0x95   :  { %v2022_v56 = vpop.permute.xlu1 %580  ;;  %v2024_v57 = vpop.permute.xlu0 %574 }
  0x96   :  { %1073 = vperm.xlu1 %1573, %v1054_v54   ;;  %1070 = vperm.xlu0 %1572, %v1053_v55   ;;  %vm621_vm3 = vcmp.eq.s32.totalorder %v2024_v57, 1  ;;  %vm623_vm6 = vcmp.eq.s32.totalorder %v2022_v56, 1 }
  0x99   :  { %v2030_v60 = vpop.permute.xlu1 %583  ;;  %v2032_v61 = vpop.permute.xlu0 %577 }
  0x9a   :  { %1079 = vperm.xlu1 %1573, %v1056_v58   ;;  %1076 = vperm.xlu0 %1572, %v1055_v59   ;;  %vm622_vm4 = vcmp.eq.s32.totalorder %v2032_v61, 1  ;;  %vm624_vm12 = vcmp.eq.s32.totalorder %v2030_v60, 1 }
  0x9d   :  { %v2038_v3 = vpop.permute.xlu1 %589  ;;  %v2040_v5 = vpop.permute.xlu0 %586 }
  0x9e   :  { %1085 = vperm.xlu1 %1573, %v1058_v62   ;;  %1082 = vperm.xlu0 %1572, %v1057_v63  }
  0xa1   :  { %v2046_v9 = vpop.permute.xlu1 %595  ;;  %v2048_v10 = vpop.permute.xlu0 %592 }
  0xa2   :  { %1091 = vperm.xlu1 %1573, %v1060_v6   ;;  %1088 = vperm.xlu0 %1572, %v1059_v7  }
  0xa5   :  { %v2054_v15 = vpop.permute.xlu1 %601  ;;  %v2056_v17 = vpop.permute.xlu0 %598 }
  0xa6   :  { %1097 = vperm.xlu1 %1573, %v1062_v11   ;;  %1094 = vperm.xlu0 %1572, %v1061_v12   ;;  %vm630_vm5 = vcmp.eq.s32.totalorder %v2054_v15, 1  ;;  %vm629_vm7 = vcmp.eq.s32.totalorder %v2056_v17, 1 }
  0xa9   :  { %v2062_v20 = vpop.permute.xlu1 %607  ;;  %v2064_v23 = vpop.permute.xlu0 %604 }
  0xaa   :  { %1103 = vperm.xlu1 %1573, %v1064_v18   ;;  %1100 = vperm.xlu0 %1572, %v1063_v19   ;;  %vm632_vm13 = vcmp.eq.s32.totalorder %v2062_v20, 1  ;;  %vm631_vm14 = vcmp.eq.s32.totalorder %v2064_v23, 1 }
  0xad   :  { %v2070_v27 = vpop.permute.xlu1 %613  ;;  %v2072_v28 = vpop.permute.xlu0 %610 }
  0xae   :  { %1109 = vperm.xlu1 %1573, %v1066_v24   ;;  %1106 = vperm.xlu0 %1572, %v1065_v16  }
  0xb1   :  { %v2078_v33 = vpop.permute.xlu1 %619  ;;  %v2080_v34 = vpop.permute.xlu0 %616 }
  0xb2   :  { %1115 = vperm.xlu1 %1573, %v1068_v31   ;;  %1112 = vperm.xlu0 %1572, %v1067_v32  }
  0xb5   :  { %v2086_v39 = vpop.permute.xlu1 %689  ;;  %v2088_v40 = vpop.permute.xlu0 %686 }
  0xb6   :  { %1201 = vperm.xlu1 %1573, %v1182_v37   ;;  %1198 = vperm.xlu0 %1572, %v1181_v38   ;;  %vm733_vm8 = vcmp.eq.s32.totalorder %v2088_v40, 1  ;;  %vm734_vm10 = vcmp.eq.s32.totalorder %v2086_v39, 1 }
  0xb9   :  { %v2094_v42 = vpop.permute.xlu1 %695  ;;  %v2096_v43 = vpop.permute.xlu0 %692 }
  0xba   :  { %1207 = vperm.xlu1 %1573, %v1184_v2   ;;  %1204 = vperm.xlu0 %1572, %v1183_v8   ;;  %vm735_vm15 = vcmp.eq.s32.totalorder %v2096_v43, 1  ;;  %vm736_vm1 = vcmp.eq.s32.totalorder %v2094_v42, 1 }
  0xbd   :  { %v2102_v45 = vpop.permute.xlu1 %701  ;;  %v2104_v46 = vpop.permute.xlu0 %698 }
  0xbe   :  { %1213 = vperm.xlu1 %1573, %v1186_v1   ;;  %1210 = vperm.xlu0 %1572, %v1185_v4  }
  0xc1   :  { %v2110_v47 = vpop.permute.xlu1 %707  ;;  %v2112_v48 = vpop.permute.xlu0 %704 }
  0xc2   :  { %1219 = vperm.xlu1 %1573, %v1188_v13   ;;  %1216 = vperm.xlu0 %1572, %v1187_v14  }
  0xc5   :  { %v2118_v49 = vpop.permute.xlu1 %713  ;;  %v711_v50 = vpop.permute.xlu0 %710 }
  0xc6   :  { %1225 = vperm.xlu1 %1573, %v1190_v21   ;;  %1222 = vperm.xlu0 %1572, %v1189_v22   ;;  %vm741_vm9 = vcmp.eq.s32.totalorder %v711_v50, 1  ;;  %vm742_vm11 = vcmp.eq.s32.totalorder %v2118_v49, 1 }
  0xc9   :  { %v2124_v51 = vpop.permute.xlu1 %719  ;;  %v2126_v52 = vpop.permute.xlu0 %716 }
  0xca   :  { %1231 = vperm.xlu1 %1573, %v1192_v25   ;;  %1228 = vperm.xlu0 %1572, %v1191_v26   ;;  %vm743_vm0 = vcmp.eq.s32.totalorder %v2126_v52, 1  ;;  %vm744_vm2 = vcmp.eq.s32.totalorder %v2124_v51, 1 }
  0xcd   :  { %v2132_v53 = vpop.permute.xlu1 %725  ;;  %v2134_v54 = vpop.permute.xlu0 %722 }
  0xce   :  { %1237 = vperm.xlu1 %1573, %v1194_v29   ;;  %1234 = vperm.xlu0 %1572, %v1193_v30  }
  0xd1   :  { %v2138_v55 = vpop.permute.xlu1 %731  ;;  %v2140_v58 = vpop.permute.xlu0 %728 }
  0xd2   :  { %1243 = vperm.xlu1 %1573, %v1196_v35   ;;  %1240 = vperm.xlu0 %1572, %v1195_v36  }
  0xd5   :  { %v2142_v59 = vpop.permute.xlu1 %817  ;;  %v2144_v41 = vpop.permute.xlu0 %814 }
  0xd9   :  { %v2146_v44 = vpop.permute.xlu1 %823  ;;  %v2148_v62 = vpop.permute.xlu0 %820 }
  0xdd   :  { %v2150_v63 = vpop.permute.xlu1 %829  ;;  %v2152_v6 = vpop.permute.xlu0 %826 }
  0xe1   :  { %v2154_v7 = vpop.permute.xlu1 %835  ;;  %v2156_v0 = vpop.permute.xlu0 %832 }
  0xe5   :  { %v2158_v11 = vpop.permute.xlu1 %841  ;;  %v2160_v12 = vpop.permute.xlu0 %838 }
  0xe9   :  { %v2162_v18 = vpop.permute.xlu1 %847  ;;  %v2164_v19 = vpop.permute.xlu0 %844 }
  0xed   :  { %v2166_v24 = vpop.permute.xlu1 %853  ;;  %v2168_v16 = vpop.permute.xlu0 %850 }
  0xf1   :  { %v2170_v31 = vpop.permute.xlu1 %859  ;;  %v2172_v32 = vpop.permute.xlu0 %856 }
  0xf2   :  { %v220_v37 = vpop.f32.mrb[0].mxu0  ;;  %v260_v38 = vpop.f32.mrb[0].mxu1 }
  0xf3   :  { %v637_v2 = vsel %vm621_vm3, %v220_v37, 0.0  ;;  %v645_v8 = vsel %vm629_vm7, %v260_v38, 0.0  ;;  %v222_v1 = vpop.f32.mrb[1].mxu0  ;;  %v262_v4 = vpop.f32.mrb[1].mxu1  ;;  %vm625_vm3 = vcmp.eq.s32.totalorder %v2040_v5, 1  ;;  %vm634_vm7 = vcmp.eq.s32.totalorder %v2070_v27, 1 }
  0xf4   :  { %v749_v57 = vsel %vm733_vm8, %v222_v1, 0.0  ;;  %v757_v13 = vsel %vm741_vm9, %v262_v4, 0.0  ;;  %v224_v14 = vpop.f32.mrb[2].mxu0  ;;  %v264_v21 = vpop.f32.mrb[2].mxu1  ;;  %vm737_vm8 = vcmp.eq.s32.totalorder %v2104_v46, 1  ;;  %vm745_vm9 = vcmp.eq.s32.totalorder %v2134_v54, 1 }
  0xf5   :  { %v2181_v22 = vadd.f32 %v749_v57, %v637_v2  ;;  %v2183_v17 = vadd.f32 %v757_v13, %v645_v8  ;;  %v638_v40 = vsel %vm622_vm4, %v224_v14, 0.0  ;;  %v646_v50 = vsel %vm630_vm5, %v264_v21, 0.0  ;;  %v226_v25 = vpop.f32.mrb[3].mxu0  ;;  %v266_v26 = vpop.f32.mrb[3].mxu1 }
  0xf6   :  { %v750_v29 = vsel %vm734_vm10, %v226_v25, 0.0  ;;  %v758_v39 = vsel %vm742_vm11, %v266_v26, 0.0  ;;  %v2189_v30 = vpop.permute.xlu1 %945  ;;  %v2191_v49 = vpop.permute.xlu0 %942  ;;  %vm633_vm4 = vcmp.eq.s32.totalorder %v2072_v28, 1  ;;  %vm626_vm5 = vcmp.eq.s32.totalorder %v2038_v3, 1 }
  0xf7   :  { %v2193_v35 = vadd.f32 %v750_v29, %v638_v40  ;;  %v2195_v36 = vadd.f32 %v758_v39, %v646_v50  ;;  %vm738_vm10 = vcmp.eq.s32.totalorder %v2102_v45, 1  ;;  %vm746_vm11 = vcmp.eq.s32.totalorder %v2132_v53, 1 }
  0xfa   :  { %v2197_v37 = vpop.permute.xlu1 %951  ;;  %v2199_v38 = vpop.permute.xlu0 %948 }
  0xfb   :  { %v230_v61 = vpop.f32.mrb[4].mxu0  ;;  %v270_v15 = vpop.f32.mrb[4].mxu1 }
  0xfc   :  { %v639_v2 = vsel %vm623_vm6, %v230_v61, 0.0  ;;  %v647_v8 = vsel %vm631_vm14, %v270_v15, 0.0  ;;  %v232_v1 = vpop.f32.mrb[5].mxu0  ;;  %v272_v4 = vpop.f32.mrb[5].mxu1  ;;  %vm627_vm6 = vcmp.eq.s32.totalorder %v2048_v10, 1  ;;  %vm636_vm14 = vcmp.eq.s32.totalorder %v2078_v33, 1 }
  0xfd   :  { %v751_v56 = vsel %vm735_vm15, %v232_v1, 0.0  ;;  %v759_v57 = vsel %vm743_vm0, %v272_v4, 0.0  ;;  %v234_v13 = vpop.f32.mrb[6].mxu0  ;;  %v274_v14 = vpop.f32.mrb[6].mxu1  ;;  %vm739_vm15 = vcmp.eq.s32.totalorder %v2112_v48, 1  ;;  %vm747_vm0 = vcmp.eq.s32.totalorder %v2140_v58, 1 }
  0xfe   :  { %v2209_v21 = vadd.f32 %v751_v56, %v639_v2  ;;  %v2211_v23 = vadd.f32 %v759_v57, %v647_v8  ;;  %v640_v43 = vsel %vm624_vm12, %v234_v13, 0.0  ;;  %v648_v52 = vsel %vm632_vm13, %v274_v14, 0.0  ;;  %v236_v40 = vpop.f32.mrb[7].mxu0  ;;  %v276_v50 = vpop.f32.mrb[7].mxu1 }
  0xff   :  { %v752_v25 = vsel %vm736_vm1, %v236_v40, 0.0  ;;  %v760_v42 = vsel %vm744_vm2, %v276_v50, 0.0  ;;  %v2217_v26 = vpop.permute.xlu1 %957  ;;  %v2219_v51 = vpop.permute.xlu0 %954  ;;  %vm635_vm12 = vcmp.eq.s32.totalorder %v2080_v34, 1  ;;  %vm628_vm13 = vcmp.eq.s32.totalorder %v2046_v9, 1 }
 0x100   :  { %v2221_v29 = vadd.f32 %v752_v25, %v640_v43  ;;  %v2223_v39 = vadd.f32 %v760_v42, %v648_v52  ;;  %vm740_vm1 = vcmp.eq.s32.totalorder %v2110_v47, 1  ;;  %vm748_vm2 = vcmp.eq.s32.totalorder %v2138_v55, 1 }
 0x102   :  { %v240_v60 = vpop.f32.mrb[8].mxu0  ;;  %v280_v61 = vpop.f32.mrb[8].mxu1 }
 0x103   :  { %v2227_v20 = vpop.permute.xlu1 %963  ;;  %v2229_v15 = vpop.permute.xlu0 %960  ;;  %v641_v2 = vsel %vm625_vm3, %v240_v60, 0.0  ;;  %v649_v8 = vsel %vm633_vm4, %v280_v61, 0.0  ;;  %vm861_vm3 = vcmp.eq.s32.totalorder %v2144_v41, 1  ;;  %vm989_vm4 = vcmp.eq.s32.totalorder %v2191_v49, 1 }
 0x104   :  { %v242_v1 = vpop.f32.mrb[9].mxu0  ;;  %v282_v5 = vpop.f32.mrb[9].mxu1 }
 0x105   :  { %v753_v28 = vsel %vm737_vm8, %v242_v1, 0.0  ;;  %v761_v4 = vsel %vm745_vm9, %v282_v5, 0.0  ;;  %v244_v56 = vpop.f32.mrb[10].mxu0  ;;  %v284_v57 = vpop.f32.mrb[10].mxu1 }
 0x106   :  { %v2237_v13 = vadd.f32 %v753_v28, %v641_v2  ;;  %v2239_v14 = vadd.f32 %v761_v4, %v649_v8  ;;  %v642_v3 = vsel %vm626_vm5, %v244_v56, 0.0  ;;  %v650_v27 = vsel %vm634_vm7, %v284_v57, 0.0  ;;  %v246_v43 = vpop.f32.mrb[11].mxu0  ;;  %v286_v46 = vpop.f32.mrb[11].mxu1 }
 0x107   :  { %v754_v52 = vsel %vm738_vm10, %v246_v43, 0.0  ;;  %v762_v54 = vsel %vm746_vm11, %v286_v46, 0.0  ;;  %v2241_v40 = vpop.permute.xlu1 %969  ;;  %v2243_v50 = vpop.permute.xlu0 %966  ;;  %vm862_vm5 = vcmp.eq.s32.totalorder %v2142_v59, 1  ;;  %vm990_vm7 = vcmp.eq.s32.totalorder %v2189_v30, 1 }
 0x108   :  { %v2245_v45 = vadd.f32 %v754_v52, %v642_v3  ;;  %v2247_v53 = vadd.f32 %v762_v54, %v650_v27  ;;  %vm863_vm10 = vcmp.eq.s32.totalorder %v2148_v62, 1  ;;  %vm991_vm11 = vcmp.eq.s32.totalorder %v2199_v38, 1 }
 0x10a   :  { %v250_v25 = vpop.f32.mrb[12].mxu0  ;;  %v290_v42 = vpop.f32.mrb[12].mxu1 }
 0x10b   :  { %v2251_v60 = vpop.permute.xlu1 %975  ;;  %v2253_v61 = vpop.permute.xlu0 %972  ;;  %v643_v2 = vsel %vm627_vm6, %v250_v25, 0.0  ;;  %v651_v8 = vsel %vm635_vm12, %v290_v42, 0.0  ;;  %vm864_vm12 = vcmp.eq.s32.totalorder %v2146_v44, 1 }
 0x10c   :  { %v252_v1 = vpop.f32.mrb[13].mxu0  ;;  %v292_v10 = vpop.f32.mrb[13].mxu1 }
 0x10d   :  { %v755_v34 = vsel %vm739_vm15, %v252_v1, 0.0  ;;  %v763_v5 = vsel %vm747_vm0, %v292_v10, 0.0  ;;  %v254_v28 = vpop.f32.mrb[14].mxu0  ;;  %v294_v4 = vpop.f32.mrb[14].mxu1  ;;  %vm865_vm15 = vcmp.eq.s32.totalorder %v2152_v6, 1  ;;  %vm993_vm0 = vcmp.eq.s32.totalorder %v2219_v51, 1 }
 0x10e   :  { %v2261_v56 = vadd.f32 %v755_v34, %v643_v2  ;;  %v2263_v57 = vadd.f32 %v763_v5, %v651_v8  ;;  %v644_v9 = vsel %vm628_vm13, %v254_v28, 0.0  ;;  %v652_v33 = vsel %vm636_vm14, %v294_v4, 0.0  ;;  %v256_v3 = vpop.f32.mrb[15].mxu0  ;;  %v296_v48 = vpop.f32.mrb[15].mxu1 }
 0x10f   :  { %v756_v27 = vsel %vm740_vm1, %v256_v3, 0.0  ;;  %v764_v58 = vsel %vm748_vm2, %v296_v48, 0.0  ;;  %v2265_v43 = vpop.permute.xlu1 %981  ;;  %v2267_v46 = vpop.permute.xlu0 %978  ;;  %vm992_vm13 = vcmp.eq.s32.totalorder %v2197_v37, 1  ;;  %vm866_vm1 = vcmp.eq.s32.totalorder %v2150_v63, 1 }
 0x110   :  { %v2269_v47 = vadd.f32 %v756_v27, %v644_v9  ;;  %v2271_v55 = vadd.f32 %v764_v58, %v652_v33  ;;  %vm994_vm2 = vcmp.eq.s32.totalorder %v2217_v26, 1 }
 0x112   :  { %v333_v52 = vpop.f32.mrb[16].mxu1  ;;  %v446_v54 = vpop.f32.mrb[16].mxu0 }
 0x113   :  { %v2274_v25 = vpop.permute.xlu1 %987  ;;  %v2276_v42 = vpop.permute.xlu0 %984  ;;  %v877_v2 = vsel %vm861_vm3, %v333_v52, 0.0 }
 0x114   :  { %v893_v8 = vadd.f32 %v877_v2, %v2181_v22  ;;  %v335_v1 = vpop.f32.mrb[17].mxu1  ;;  %v2280_v10 = vpop.f32.mrb[17].mxu0 }
 0x115   :  { %v1005_v34 = vsel %vm989_vm4, %v335_v1, 0.0  ;;  %v337_v5 = vpop.f32.mrb[18].mxu1  ;;  %v450_v28 = vpop.f32.mrb[18].mxu0 }
 0x116   :  { %v1021_v41 = vadd.f32 %v1005_v34, %v893_v8  ;;  %v878_v4 = vsel %vm862_vm5, %v337_v5, 0.0  ;;  %v339_v9 = vpop.f32.mrb[19].mxu1  ;;  %v2284_v33 = vpop.f32.mrb[19].mxu0  ;;  %vm867_vm5 = vcmp.eq.s32.totalorder %v2156_v0, 1 }
 0x117   :  { %v894_v3 = vadd.f32 %v878_v4, %v2193_v35  ;;  %v1006_v49 = vsel %vm990_vm7, %v339_v9, 0.0  ;;  %v1074_v48 = vpop.permute.xlu1 %1073  ;;  %v1071_v22 = vpop.permute.xlu0 %1070  ;;  %vm995_vm7 = vcmp.eq.s32.totalorder %v2229_v15, 1 }
 0x118   :  { %vm1118_vm8 = vcmp.eq.s32.totalorder %v1074_v48, 1  ;;  %vm1117_vm9 = vcmp.eq.s32.totalorder %v1071_v22, 1 }
 0x119   :  { %v1022_v27 = vadd.f32 %v1006_v49, %v894_v3  ;;  %v1133_v58 = vsel %vm1117_vm9, %v446_v54, 0.0  ;;  %v1134_v59 = vsel %vm1118_vm8, %v450_v28, 0.0  ;;  %vm868_vm8 = vcmp.eq.s32.totalorder %v2154_v7, 1 }
 0x11a   :  { %v2288_v52 = vadd.f32 %v1133_v58, %v1021_v41  ;;  %v343_v30 = vpop.f32.mrb[20].mxu1  ;;  %v456_v2 = vpop.f32.mrb[20].mxu0  ;;  %vm996_vm9 = vcmp.eq.s32.totalorder %v2227_v20, 1 }
 0x11b   :  { %v2290_v8 = vadd.f32 %v1134_v59, %v1022_v27  ;;  %v1080_v1 = vpop.permute.xlu1 %1079  ;;  %v1077_v34 = vpop.permute.xlu0 %1076  ;;  %v879_v5 = vsel %vm863_vm10, %v343_v30, 0.0 }
 0x11c   :  { %vm1119_vm6 = vcmp.eq.s32.totalorder %v1077_v34, 1  ;;  %v895_v35 = vadd.f32 %v879_v5, %v2209_v21  ;;  %v345_v4 = vpop.f32.mrb[21].mxu1  ;;  %v2294_v9 = vpop.f32.mrb[21].mxu0  ;;  %vm1120_vm14 = vcmp.eq.s32.totalorder %v1080_v1, 1 }
 0x11d   :  { %v1007_v62 = vsel %vm991_vm11, %v345_v4, 0.0  ;;  %v347_v54 = vpop.f32.mrb[22].mxu1  ;;  %v460_v28 = vpop.f32.mrb[22].mxu0  ;;  %v1135_v38 = vsel %vm1119_vm6, %v456_v2, 0.0  ;;  %vm869_vm6 = vcmp.eq.s32.totalorder %v2160_v12, 1 }
 0x11e   :  { %v1023_v41 = vadd.f32 %v1007_v62, %v895_v35  ;;  %v880_v3 = vsel %vm864_vm12, %v347_v54, 0.0  ;;  %v349_v49 = vpop.f32.mrb[23].mxu1  ;;  %v2298_v48 = vpop.f32.mrb[23].mxu0  ;;  %v1136_v30 = vsel %vm1120_vm14, %v460_v28, 0.0  ;;  %vm997_vm12 = vcmp.eq.s32.totalorder %v2243_v50, 1 }
 0x11f   :  { %v896_v22 = vadd.f32 %v880_v3, %v2221_v29  ;;  %v1008_v21 = vsel %vm992_vm13, %v349_v49, 0.0  ;;  %v1086_v27 = vpop.permute.xlu1 %1085  ;;  %v1083_v58 = vpop.permute.xlu0 %1082  ;;  %vm870_vm13 = vcmp.eq.s32.totalorder %v2158_v11, 1  ;;  %vm871_vm14 = vcmp.eq.s32.totalorder %v2164_v19, 1  ;;  %v1295_v19 = vld [vmem:[%s2526_s3 + $0x10] sm:$0xff] }
 0x120   :  { %v2301_v59 = vadd.f32 %v1135_v38, %v1023_v41  ;;  %vm1121_vm3 = vcmp.eq.s32.totalorder %v1083_v58, 1  ;;  %vm1122_vm4 = vcmp.eq.s32.totalorder %v1086_v27, 1 }
 0x121   :  { %v1024_v44 = vadd.f32 %v1008_v21, %v896_v22 }
 0x122   :  { %v353_v34 = vpop.f32.mrb[24].mxu1  ;;  %v466_v37 = vpop.f32.mrb[24].mxu0 }
 0x123   :  { %v2304_v5 = vadd.f32 %v1136_v30, %v1024_v44  ;;  %v1092_v35 = vpop.permute.xlu1 %1091  ;;  %v1089_v4 = vpop.permute.xlu0 %1088  ;;  %v881_v62 = vsel %vm865_vm15, %v353_v34, 0.0  ;;  %v1137_v22 = vsel %vm1121_vm3, %v466_v37, 0.0  ;;  %vm872_vm15 = vcmp.eq.s32.totalorder %v2162_v18, 1 }
 0x124   :  { %v897_v29 = vadd.f32 %v881_v62, %v2237_v13  ;;  %v355_v2 = vpop.f32.mrb[25].mxu1  ;;  %v2308_v1 = vpop.f32.mrb[25].mxu0  ;;  %vm1123_vm10 = vcmp.eq.s32.totalorder %v1089_v4, 1  ;;  %vm1124_vm11 = vcmp.eq.s32.totalorder %v1092_v35, 1  ;;  %vm999_vm3 = vcmp.eq.s32.totalorder %v2253_v61, 1 }
 0x125   :  { %v1009_v54 = vsel %vm993_vm0, %v355_v2, 0.0  ;;  %v357_v41 = vpop.f32.mrb[26].mxu1  ;;  %v470_v6 = vpop.f32.mrb[26].mxu0  ;;  %vm998_vm0 = vcmp.eq.s32.totalorder %v2241_v40, 1 }
 0x126   :  { %v1025_v28 = vadd.f32 %v1009_v54, %v897_v29  ;;  %v882_v3 = vsel %vm866_vm1, %v357_v41, 0.0  ;;  %v359_v49 = vpop.f32.mrb[27].mxu1  ;;  %v2312_v38 = vpop.f32.mrb[27].mxu0  ;;  %v1138_v26 = vsel %vm1122_vm4, %v470_v6, 0.0 }
 0x127   :  { %v898_v51 = vadd.f32 %v882_v3, %v2245_v45  ;;  %v1010_v13 = vsel %vm994_vm2, %v359_v49, 0.0  ;;  %v2315_v21 = vpop.permute.xlu1 %1097  ;;  %v1095_v44 = vpop.permute.xlu0 %1094  ;;  %vm1000_vm2 = vcmp.eq.s32.totalorder %v2251_v60, 1 }
 0x128   :  { %v2317_v30 = vadd.f32 %v1137_v22, %v1025_v28  ;;  %vm1125_vm1 = vcmp.eq.s32.totalorder %v1095_v44, 1  ;;  %v1294_v44 = vld [vmem:[%s2526_s3 + $0x8] sm:$0xff] }
 0x129   :  { %v1026_v63 = vadd.f32 %v1010_v13, %v898_v51 }
 0x12a   :  { %v363_v58 = vpop.f32.mrb[28].mxu1  ;;  %v476_v34 = vpop.f32.mrb[28].mxu0 }
 0x12b   :  { %v2320_v62 = vadd.f32 %v1138_v26, %v1026_v63  ;;  %v2322_v29 = vpop.permute.xlu1 %1103  ;;  %v2324_v37 = vpop.permute.xlu0 %1100  ;;  %v883_v45 = vsel %vm867_vm5, %v363_v58, 0.0  ;;  %v1139_v51 = vsel %vm1123_vm10, %v476_v34, 0.0 }
 0x12c   :  { %v899_v2 = vadd.f32 %v883_v45, %v2261_v56  ;;  %v365_v54 = vpop.f32.mrb[29].mxu1  ;;  %v2328_v41 = vpop.f32.mrb[29].mxu0  ;;  %vm1127_vm10 = vcmp.eq.s32.totalorder %v2324_v37, 1 }
 0x12d   :  { %v1011_v0 = vsel %vm995_vm7, %v365_v54, 0.0  ;;  %v367_v27 = vpop.f32.mrb[30].mxu1  ;;  %v480_v6 = vpop.f32.mrb[30].mxu0  ;;  %vm1126_vm7 = vcmp.eq.s32.totalorder %v2315_v21, 1 }
 0x12e   :  { %v1027_v28 = vadd.f32 %v1011_v0, %v899_v2  ;;  %v884_v3 = vsel %vm868_vm8, %v367_v27, 0.0  ;;  %v369_v49 = vpop.f32.mrb[31].mxu1  ;;  %v2332_v22 = vpop.f32.mrb[31].mxu0  ;;  %v1140_v20 = vsel %vm1124_vm11, %v480_v6, 0.0  ;;  %vm873_vm8 = vcmp.eq.s32.totalorder %v2168_v16, 1  ;;  %v1300_v16 = vld [vmem:[%s2526_s3 + $0x38] sm:$0xff] }
 0x12f   :  { %v900_v15 = vadd.f32 %v884_v3, %v2269_v47  ;;  %v1012_v56 = vsel %vm996_vm9, %v369_v49, 0.0  ;;  %v2335_v13 = vpop.permute.xlu1 %1109  ;;  %v2337_v63 = vpop.permute.xlu0 %1106  ;;  %vm1128_vm9 = vcmp.eq.s32.totalorder %v2322_v29, 1  ;;  %v1297_v29 = vld [vmem:[%s2526_s3 + $0x20] sm:$0xff] }
 0x130   :  { %v2339_v7 = vadd.f32 %v1139_v51, %v1027_v28  ;;  %vm1129_vm11 = vcmp.eq.s32.totalorder %v2337_v63, 1 }
 0x131   :  { %v1028_v26 = vadd.f32 %v1012_v56, %v900_v15 }
 0x132   :  { %v373_v4 = vpop.f32.mrb[32].mxu1  ;;  %v486_v58 = vpop.f32.mrb[32].mxu0 }
 0x133   :  { %v2342_v45 = vadd.f32 %v1140_v20, %v1028_v26  ;;  %v2344_v2 = vpop.permute.xlu1 %1115  ;;  %v2346_v34 = vpop.permute.xlu0 %1112  ;;  %v885_v47 = vsel %vm869_vm6, %v373_v4, 0.0 }
 0x134   :  { %v901_v54 = vadd.f32 %v885_v47, %v2183_v17  ;;  %v375_v0 = vpop.f32.mrb[33].mxu1  ;;  %v2350_v27 = vpop.f32.mrb[33].mxu0  ;;  %v1141_v17 = vsel %vm1125_vm1, %v486_v58, 0.0  ;;  %vm1002_vm1 = vcmp.eq.s32.totalorder %v2265_v43, 1 }
 0x135   :  { %v1013_v12 = vsel %vm997_vm12, %v375_v0, 0.0  ;;  %v377_v35 = vpop.f32.mrb[34].mxu1  ;;  %v490_v6 = vpop.f32.mrb[34].mxu0 }
 0x136   :  { %v1029_v28 = vadd.f32 %v1013_v12, %v901_v54  ;;  %v886_v3 = vsel %vm870_vm13, %v377_v35, 0.0  ;;  %v379_v50 = vpop.f32.mrb[35].mxu1  ;;  %v2356_v49 = vpop.f32.mrb[35].mxu0  ;;  %v1142_v58 = vsel %vm1126_vm7, %v490_v6, 0.0  ;;  %vm1001_vm13 = vcmp.eq.s32.totalorder %v2267_v46, 1 }
 0x137   :  { %v902_v11 = vadd.f32 %v886_v3, %v2195_v36  ;;  %v1014_v51 = vsel %vm998_vm0, %v379_v50, 0.0  ;;  %v1202_v15 = vpop.permute.xlu1 %1201  ;;  %v1199_v56 = vpop.permute.xlu0 %1198  ;;  %v1293_v36 = vld [vmem:[%s2526_s3] sm:$0xff]  ;;  %vm1130_vm0 = vcmp.eq.s32.totalorder %v2335_v13, 1 }
 0x138   :  { %v2361_v26 = vadd.f32 %v1141_v17, %v1029_v28  ;;  %vm1246_vm4 = vcmp.eq.s32.totalorder %v1202_v15, 1  ;;  %vm1245_vm5 = vcmp.eq.s32.totalorder %v1199_v56, 1 }
 0x139   :  { %v1030_v40 = vadd.f32 %v1014_v51, %v902_v11  ;;  %v1262_v20 = vsel %vm1246_vm4, %v2284_v33, 0.0  ;;  %v1261_v4 = vsel %vm1245_vm5, %v2280_v10, 0.0  ;;  %vm1131_vm5 = vcmp.eq.s32.totalorder %v2346_v34, 1 }
 0x13a   :  { %v1278_v21 = vadd.f32 %v1262_v20, %v2290_v8  ;;  %v1277_v47 = vadd.f32 %v1261_v4, %v2288_v52  ;;  %v383_v54 = vpop.f32.mrb[36].mxu1  ;;  %v496_v0 = vpop.f32.mrb[36].mxu0  ;;  %v1296_v8 = vld [vmem:[%s2526_s3 + $0x18] sm:$0xff] }
 0x13b   :  { %v2378_v33 = vadd.f32 %v1142_v58, %v1030_v40  ;;  %v1208_v12 = vpop.permute.xlu1 %1207  ;;  %v1205_v35 = vpop.permute.xlu0 %1204  ;;  %v887_v10 = vsel %vm871_vm14, %v383_v54, 0.0  ;;  %vm874_vm14 = vcmp.eq.s32.totalorder %v2166_v24, 1 }
 0x13c   :  { %v1310_v28 = vadd.f32 %v1294_v44, %v1278_v21  ;;  %v1309_v3 = vadd.f32 %v1293_v36, %v1277_v47  ;;  %vm1248_vm6 = vcmp.eq.s32.totalorder %v1208_v12, 1  ;;  %vm1247_vm12 = vcmp.eq.s32.totalorder %v1205_v35, 1  ;;  %v385_v52 = vpop.f32.mrb[37].mxu1  ;;  %v2385_v6 = vpop.f32.mrb[37].mxu0 }
 0x13d   :  { %v1264_v50 = vsel %vm1248_vm6, %v2298_v48, 0.0  ;;  %v1263_v17 = vsel %vm1247_vm12, %v2294_v9, 0.0  ;;  %v903_v11 = vadd.f32 %v887_v10, %v2211_v23  ;;  %v1015_v51 = vsel %vm999_vm3, %v385_v52, 0.0  ;;  %v387_v15 = vpop.f32.mrb[38].mxu1  ;;  %v500_v56 = vpop.f32.mrb[38].mxu0  ;;  %v1298_v10 = vld [vmem:[%s2526_s3 + $0x28] sm:$0xff] }
 0x13e   :  { %v1326_v40 = vmax.f32 %v1310_v28, 0.0  ;;  %v1325_v44 = vmax.f32 %v1309_v3, 0.0  ;;  %v1280_v20 = vadd.f32 %v1264_v50, %v2304_v5  ;;  %v1279_v48 = vadd.f32 %v1263_v17, %v2301_v59  ;;  %v389_v36 = vpop.f32.mrb[39].mxu1  ;;  %v2399_v4 = vpop.f32.mrb[39].mxu0 }
 0x13f   :  { %v1143_v23 = vsel %vm1127_vm10, %v496_v0, 0.0  ;;  %v1031_v61 = vadd.f32 %v1015_v51, %v903_v11  ;;  %v888_v9 = vsel %vm872_vm15, %v387_v15, 0.0  ;;  %v1016_v58 = vsel %vm1000_vm2, %v389_v36, 0.0  ;;  %v1214_v21 = vpop.permute.xlu1 %1213  ;;  %v1211_v47 = vpop.permute.xlu0 %1210  ;;  %v1299_v36 = vld [vmem:[%s2526_s3 + $0x30] sm:$0xff] }
 0x140   :  { %v1517_v59 = vpack.c.bf16 %v1326_v40, %v1325_v44  ;;  %v1312_v5 = vadd.f32 %v1296_v8, %v1280_v20  ;;  %v1311_v54 = vadd.f32 %v1295_v19, %v1279_v48  ;;  %v904_v12 = vadd.f32 %v888_v9, %v2223_v39 }
 0x141   :  { %v2410_v35 = vadd.f32 %v1143_v23, %v1031_v61  ;;  %v1144_v37 = vsel %vm1128_vm9, %v500_v56, 0.0  ;;  %vm1250_vm3 = vcmp.eq.s32.totalorder %v1214_v21, 1  ;;  %vm1249_vm4 = vcmp.eq.s32.totalorder %v1211_v47, 1 }
 0x142   :  { %vm875_vm15 = vcmp.eq.s32.totalorder %v2172_v32, 1  ;;  %1518 = vst [vmem:[#allocation5] sm:$0xff] %v1517_v59   ;;  %v1328_v18 = vmax.f32 %v1312_v5, 0.0  ;;  %v1327_v60 = vmax.f32 %v1311_v54, 0.0  ;;  %v1032_v0 = vadd.f32 %v1016_v58, %v904_v12  ;;  %v393_v39 = vpop.f32.mrb[40].mxu1  ;;  %v506_v3 = vpop.f32.mrb[40].mxu0 }
 0x143   :  { %v1266_v28 = vsel %vm1250_vm3, %v2312_v38, 0.0  ;;  %v1265_v52 = vsel %vm1249_vm4, %v2308_v1, 0.0  ;;  %v1220_v50 = vpop.permute.xlu1 %1219  ;;  %v1217_v19 = vpop.permute.xlu0 %1216  ;;  %v889_v17 = vsel %vm873_vm8, %v393_v39, 0.0  ;;  %v1145_v11 = vsel %vm1129_vm11, %v506_v3, 0.0  ;;  %v1304_v32 = vld [vmem:[%s2526_s3 + $0x58] sm:$0xff] }
 0x144   :  { %v1282_v8 = vadd.f32 %v1266_v28, %v2320_v62  ;;  %v1522_v51 = vpack.c.bf16 %v1328_v18, %v1327_v60  ;;  %v2428_v38 = vadd.f32 %v1144_v37, %v1032_v0  ;;  %v1281_v15 = vadd.f32 %v1265_v52, %v2317_v30  ;;  %v395_v62 = vpop.f32.mrb[41].mxu1  ;;  %v2431_v56 = vpop.f32.mrb[41].mxu0  ;;  %v1302_v0 = vld [vmem:[%s2526_s3 + $0x48] sm:$0xff]  ;;  %v1301_v52 = vld [vmem:[%s2526_s3 + $0x40] sm:$0xff] }
 0x145   :  { %vm1252_vm2 = vcmp.eq.s32.totalorder %v1220_v50, 1  ;;  %vm1251_vm7 = vcmp.eq.s32.totalorder %v1217_v19, 1  ;;  %v905_v63 = vadd.f32 %v889_v17, %v2239_v14  ;;  %v397_v44 = vpop.f32.mrb[42].mxu1  ;;  %v510_v20 = vpop.f32.mrb[42].mxu0  ;;  %vm1003_vm8 = vcmp.eq.s32.totalorder %v2276_v42, 1 }
 0x146   :  { %v1314_v1 = vadd.f32 %v1298_v10, %v1282_v8  ;;  %v1268_v40 = vsel %vm1252_vm2, %v2332_v22, 0.0  ;;  %1554 = vst [vmem:[#allocation5 + $0x8] sm:$0xff] %v1522_v51   ;;  %v1313_v30 = vadd.f32 %v1297_v29, %v1281_v15  ;;  %v1267_v23 = vsel %vm1251_vm7, %v2328_v41, 0.0  ;;  %v399_v61 = vpop.f32.mrb[43].mxu1  ;;  %v2447_v9 = vpop.f32.mrb[43].mxu0 }
 0x147   :  { %v1284_v48 = vadd.f32 %v1268_v40, %v2342_v45  ;;  %v1017_v22 = vsel %vm1001_vm13, %v395_v62, 0.0  ;;  %vm876_vm9 = vcmp.eq.s32.totalorder %v2170_v31, 1  ;;  %vm1132_vm10 = vcmp.eq.s32.totalorder %v2344_v2, 1  ;;  %v1226_v47 = vpop.permute.xlu1 %1225  ;;  %v1223_v59 = vpop.permute.xlu0 %1222  ;;  %v1306_v31 = vld [vmem:[%s2526_s3 + $0x68] sm:$0xff] }
 0x148   :  { %v1330_v14 = vmax.f32 %v1314_v1, 0.0  ;;  %v1283_v58 = vadd.f32 %v1267_v23, %v2339_v7  ;;  %v1033_v45 = vadd.f32 %v1017_v22, %v905_v63  ;;  %v890_v21 = vsel %vm874_vm14, %v397_v44, 0.0 }
 0x149   :  { %vm1004_vm11 = vcmp.eq.s32.totalorder %v2274_v25, 1  ;;  %v1329_v46 = vmax.f32 %v1313_v30, 0.0  ;;  %v1316_v41 = vadd.f32 %v1300_v16, %v1284_v48  ;;  %v906_v5 = vadd.f32 %v890_v21, %v2247_v53 }
 0x14a   :  { %v1146_v54 = vsel %vm1130_vm0, %v510_v20, 0.0  ;;  %v1315_v12 = vadd.f32 %v1299_v36, %v1283_v58  ;;  %v2458_v37 = vadd.f32 %v1145_v11, %v1033_v45  ;;  %v1018_v7 = vsel %vm1002_vm1, %v399_v61, 0.0  ;;  %v403_v53 = vpop.f32.mrb[44].mxu1  ;;  %v516_v28 = vpop.f32.mrb[44].mxu0 }
 0x14b   :  { %vm1254_vm6 = vcmp.eq.s32.totalorder %v1226_v47, 1  ;;  %v1527_v24 = vpack.c.bf16 %v1330_v14, %v1329_v46  ;;  %v1332_v18 = vmax.f32 %v1316_v41, 0.0  ;;  %v1034_v60 = vadd.f32 %v1018_v7, %v906_v5  ;;  %v1232_v3 = vpop.permute.xlu1 %1231  ;;  %v1229_v8 = vpop.permute.xlu0 %1228 }
 0x14c   :  { %v1270_v10 = vsel %vm1254_vm6, %v2356_v49, 0.0  ;;  %v1331_v13 = vmax.f32 %v1315_v12, 0.0  ;;  %vm1253_vm12 = vcmp.eq.s32.totalorder %v1223_v59, 1  ;;  %v891_v43 = vsel %vm875_vm15, %v403_v53, 0.0  ;;  %v405_v49 = vpop.f32.mrb[45].mxu1  ;;  %v518_v19 = vpop.f32.mrb[45].mxu0 }
 0x14d   :  { %v1286_v39 = vadd.f32 %v1270_v10, %v2378_v33  ;;  %1555 = vst [vmem:[#allocation5 + $0x10] sm:$0xff] %v1527_v24   ;;  %v1162_v29 = vadd.f32 %v1146_v54, %v1034_v60  ;;  %v1269_v50 = vsel %vm1253_vm12, %v2350_v27, 0.0  ;;  %vm1256_vm13 = vcmp.eq.s32.totalorder %v1232_v3, 1  ;;  %v407_v15 = vpop.f32.mrb[46].mxu1  ;;  %v520_v62 = vpop.f32.mrb[46].mxu0  ;;  %v1303_v27 = vld [vmem:[%s2526_s3 + $0x50] sm:$0xff] }
 0x14e   :  { %vm1255_vm14 = vcmp.eq.s32.totalorder %v1229_v8, 1  ;;  %v1532_v17 = vpack.c.bf16 %v1332_v18, %v1331_v13  ;;  %v1285_v11 = vadd.f32 %v1269_v50, %v2361_v26  ;;  %v1272_v51 = vsel %vm1256_vm13, %v2399_v4, 0.0  ;;  %v409_v63 = vpop.f32.mrb[47].mxu1  ;;  %v522_v44 = vpop.f32.mrb[47].mxu0  ;;  %v1307_v18 = vld [vmem:[%s2526_s3 + $0x70] sm:$0xff] }
 0x14f   :  { %v1318_v33 = vadd.f32 %v1302_v0, %v1286_v39  ;;  %v1288_v1 = vadd.f32 %v1272_v51, %v2428_v38  ;;  %v1271_v16 = vsel %vm1255_vm14, %v2385_v6, 0.0  ;;  %v907_v40 = vadd.f32 %v891_v43, %v2263_v57  ;;  %v1238_v48 = vpop.permute.xlu1 %1237  ;;  %v1235_v36 = vpop.permute.xlu0 %1234 }
 0x150   :  { %v1147_v26 = vsel %vm1131_vm5, %v516_v28, 0.0  ;;  %1556 = vst [vmem:[#allocation5 + $0x18] sm:$0xff] %v1532_v17   ;;  %v1317_v4 = vadd.f32 %v1301_v52, %v1285_v11  ;;  %v1287_v30 = vadd.f32 %v1271_v16, %v2410_v35  ;;  %v1019_v38 = vsel %vm1003_vm8, %v405_v49, 0.0 }
 0x151   :  { %v1334_v20 = vmax.f32 %v1318_v33, 0.0  ;;  %v1320_v23 = vadd.f32 %v1304_v32, %v1288_v1  ;;  %v1035_v22 = vadd.f32 %v1019_v38, %v907_v40  ;;  %v892_v57 = vsel %vm876_vm9, %v407_v15, 0.0 }
 0x152   :  { %v1148_v34 = vsel %vm1132_vm10, %v520_v62, 0.0  ;;  %v1333_v6 = vmax.f32 %v1317_v4, 0.0  ;;  %v1319_v61 = vadd.f32 %v1303_v27, %v1287_v30  ;;  %v908_v14 = vadd.f32 %v892_v57, %v2271_v55  ;;  %v1305_v55 = vld [vmem:[%s2526_s3 + $0x60] sm:$0xff] }
 0x153   :  { %v1020_v35 = vsel %vm1004_vm11, %v409_v63, 0.0  ;;  %v1336_v58 = vmax.f32 %v1320_v23, 0.0  ;;  %v1163_v42 = vadd.f32 %v1147_v26, %v1035_v22  ;;  %vm1258_vm0 = vcmp.eq.s32.totalorder %v1238_v48, 1  ;;  %v1244_v59 = vpop.permute.xlu1 %1243  ;;  %v1241_v46 = vpop.permute.xlu0 %1240 }
 0x154   :  { %vm1257_vm1 = vcmp.eq.s32.totalorder %v1235_v36, 1  ;;  %v1537_v45 = vpack.c.bf16 %v1334_v20, %v1333_v6  ;;  %v1335_v21 = vmax.f32 %v1319_v61, 0.0  ;;  %v1036_v47 = vadd.f32 %v1020_v35, %v908_v14 }
 0x155   :  { %v1274_v2 = vsel %vm1258_vm0, %v2447_v9, 0.0  ;;  %v1273_v25 = vsel %vm1257_vm1, %v2431_v56, 0.0  ;;  %vm1260_vm3 = vcmp.eq.s32.totalorder %v1244_v59, 1  ;;  %vm1259_vm4 = vcmp.eq.s32.totalorder %v1241_v46, 1  ;;  %v1308_v9 = vld [vmem:[%s2526_s3 + $0x78] sm:$0xff] }
 0x156   :  { %v1290_v41 = vadd.f32 %v1274_v2, %v1162_v29  ;;  %1557 = vst [vmem:[#allocation5 + $0x20] sm:$0xff] %v1537_v45   ;;  %v1542_v5 = vpack.c.bf16 %v1336_v58, %v1335_v21  ;;  %v1164_v54 = vadd.f32 %v1148_v34, %v1036_v47  ;;  %v1289_v12 = vadd.f32 %v1273_v25, %v2458_v37 }
 0x157   :  { %v1276_v7 = vsel %vm1260_vm3, %v522_v44, 0.0  ;;  %v1275_v60 = vsel %vm1259_vm4, %v518_v19, 0.0 }
 0x158   :  { %v1322_v24 = vadd.f32 %v1306_v31, %v1290_v41  ;;  %1558 = vst [vmem:[#allocation5 + $0x28] sm:$0xff] %v1542_v5   ;;  %v1321_v56 = vadd.f32 %v1305_v55, %v1289_v12  ;;  %v1292_v0 = vadd.f32 %v1276_v7, %v1164_v54  ;;  %v1291_v10 = vadd.f32 %v1275_v60, %v1163_v42 }
 0x15a   :  { %v1338_v53 = vmax.f32 %v1322_v24, 0.0  ;;  %v1337_v28 = vmax.f32 %v1321_v56, 0.0  ;;  %v1324_v13 = vadd.f32 %v1308_v9, %v1292_v0  ;;  %v1323_v39 = vadd.f32 %v1307_v18, %v1291_v10 }
 0x15c   :  { %v1547_v37 = vpack.c.bf16 %v1338_v53, %v1337_v28  ;;  %v1340_v3 = vmax.f32 %v1324_v13, 0.0  ;;  %v1339_v8 = vmax.f32 %v1323_v39, 0.0 }
 0x15e   :  { %1559 = vst [vmem:[#allocation5 + $0x30] sm:$0xff] %v1547_v37   ;;  %v1552_v43 = vpack.c.bf16 %v1340_v3, %v1339_v8 }
 0x160   :  { %1560 = vst [vmem:[#allocation5 + $0x38] sm:$0xff] %v1552_v43  }
 0x161   :  { %1633 = shalt.err (!%p1630_p12)
}
 0x162   :  { %s1634_s28 = scalar_lea.hbm %s2527_s4, 1024 }
 0x163   :  { %p1635_p13 = scmp.ne.s32.totalorder %s2527_s4, %s1634_s28  ;;  %p1638_p0 = scmp.lt.u32.totalorder %s1634_s28, %s2527_s4 }
 0x165   :  { %p1640_p1 = pnand %p1638_p0, %p1635_p13 }
 0x167   :  { %1643 = shalt.err (!%p1640_p1)
}
 0x168   :  { %s1653_s1 = smov 64   ;;  %s1654_s7 = smov 4  }
 0x169   :  { %1432 = dma.vmem_to_hbm [thread:$0]  %s1427_s25, 1024, %s2527_s4, [#allocation4], %s1653_s1, %s1653_s1, %s1654_s7  }
 0x16a   :  { %1646 = dma.done.wait [#allocation4], 1024  }
 0x16b   :  { %1647 = vsyncadd [#allocation4], 4294966272 }
 0x16c   :  { %1436 = vsyncpa [#allocation3], 1 }
 0x16d   :  { %1437 = vsyncpa [#allocation4], 1 }

</bundles_post_ra>
